<compile_context>
chip_gen: v7x
topology: tpu7x:2x2x1
jax: 0.10.0
libtpu: 0.0.40
codegen_flags: <defaults>
</compile_context>

<pallas_src>
import jax
import jax.numpy as jnp
from jax.experimental import pallas as pl
from jax.experimental.pallas import tpu as pltpu

BN_EPS = 1e-5


def _same_pads(k):
    """PyTorch Conv1d(padding='same') asymmetric zero padding (left, right)."""
    total = k - 1
    left = total // 2
    return left, total - left


def _im2col(x_blc, k):
    """(B, L, C) -> (B, L, k*C) with 'same' zero padding; j-major, c-minor column order."""
    B, L, C = x_blc.shape
    pad_l, pad_r = _same_pads(k)
    xp = jnp.pad(x_blc, ((0, 0), (pad_l, pad_r), (0, 0)))
    cols = [xp[:, j:j + L, :] for j in range(k)]
    return jnp.concatenate(cols, axis=-1)


# ---------------------------------------------------------------------------
# Fused kernel: conv1(im2col)+BN+ReLU -> conv2+BN+ReLU -> conv3+BN+ReLU
#               -> GAP(L) -> Linear -> Softmax      (one batch element / step)
# ---------------------------------------------------------------------------
def _fcn_fused_kernel(x1_ref, w1_ref, s1_ref, w2_ref, s2_ref, w3_ref, s3_ref,
                      lw_ref, lb_ref, o_ref, h1p_ref, h2p_ref):
    # x1_ref : (1, L, K1*Cin) bf16   im2col'd input for this batch element
    # w1_ref : (K1*Cin, C1)   bf16   layer-1 weights (BN scale folded)
    # s1_ref : (1, C1)        f32    layer-1 shift (bias + BN)
    # w2_ref : (K2, C1, C2)   bf16   layer-2 taps (BN scale folded)
    # s2_ref : (1, C2)        f32
    # w3_ref : (K3, C2, C3)   bf16   layer-3 taps (BN scale folded)
    # s3_ref : (1, C3)        f32
    # lw_ref : (C3, O) f32, lb_ref: (1, O) f32
    # o_ref  : (1, 1, O) f32         softmax probabilities
    # h1p_ref: (L+K2-1, C1) bf16 VMEM scratch (padded conv2 input)
    # h2p_ref: (L+K3-1, C2) bf16 VMEM scratch (padded conv3 input)
    L = x1_ref.shape[1]
    K2, C1, C2 = w2_ref.shape
    K3, _, C3 = w3_ref.shape
    p2l, p2r = _same_pads(K2)
    p3l, p3r = _same_pads(K3)

    # ---- layer 1: single MXU pass (bf16 x bf16 -> f32) + folded BN + ReLU ----
    acc1 = jnp.dot(x1_ref[0], w1_ref[...], preferred_element_type=jnp.float32)
    h1 = jnp.maximum(acc1 + s1_ref[...], 0.0).astype(h1p_ref.dtype)
    if p2l:
        h1p_ref[0:p2l, :] = jnp.zeros((p2l, C1), h1p_ref.dtype)
    h1p_ref[p2l:p2l + L, :] = h1
    if p2r:
        h1p_ref[p2l + L:p2l + L + p2r, :] = jnp.zeros((p2r, C1), h1p_ref.dtype)

    # ---- layer 2: tap-loop conv + folded BN + ReLU ----
    acc2 = jnp.zeros((L, C2), jnp.float32)
    for j in range(K2):                               # static unroll over taps
        acc2 = acc2 + jnp.dot(h1p_ref[j:j + L, :], w2_ref[j],
                              preferred_element_type=jnp.float32)
    h2 = jnp.maximum(acc2 + s2_ref[...], 0.0).astype(h2p_ref.dtype)
    if p3l:
        h2p_ref[0:p3l, :] = jnp.zeros((p3l, C2), h2p_ref.dtype)
    h2p_ref[p3l:p3l + L, :] = h2
    if p3r:
        h2p_ref[p3l + L:p3l + L + p3r, :] = jnp.zeros((p3r, C2), h2p_ref.dtype)

    # ---- layer 3: tap-loop conv + folded BN + ReLU (kept in f32, never stored) ----
    acc3 = jnp.zeros((L, C3), jnp.float32)
    for j in range(K3):
        acc3 = acc3 + jnp.dot(h2p_ref[j:j + L, :], w3_ref[j],
                              preferred_element_type=jnp.float32)
    h3 = jnp.maximum(acc3 + s3_ref[...], 0.0)

    # ---- GAP over L + Linear + Softmax (all f32) ----
    gap = jnp.mean(h3, axis=0, keepdims=True)                     # (1, C3)
    logits = jnp.dot(gap, lw_ref[...],
                     preferred_element_type=jnp.float32) + lb_ref[...]
    m = jnp.max(logits, axis=1, keepdims=True)
    e = jnp.exp(logits - m)
    o_ref[0] = (e / jnp.sum(e, axis=1, keepdims=True)).astype(o_ref.dtype)


def fcn_fused_forward(x1, params):
    """x1: (B, L, K1*Cin) bf16 im2col'd input -> (B, out_dim) f32 probabilities."""
    B, L, KC = x1.shape
    w1, s1 = params["w1"], params["s1"]
    w2, s2 = params["w2"], params["s2"]
    w3, s3 = params["w3"], params["s3"]
    lw, lb = params["lw"], params["lb"]
    K2, C1, C2 = w2.shape
    K3, _, C3 = w3.shape
    O = lw.shape[1]

    out = pl.pallas_call(
        _fcn_fused_kernel,
        out_shape=jax.ShapeDtypeStruct((B, 1, O), jnp.float32),
        grid_spec=pltpu.PrefetchScalarGridSpec(
            num_scalar_prefetch=0,
            grid=(B,),
            in_specs=[
                pl.BlockSpec((1, L, KC), lambda b: (b, 0, 0)),      # im2col input
                pl.BlockSpec((KC, C1), lambda b: (0, 0)),           # w1 (resident)
                pl.BlockSpec((1, C1), lambda b: (0, 0)),            # s1
                pl.BlockSpec((K2, C1, C2), lambda b: (0, 0, 0)),    # w2
                pl.BlockSpec((1, C2), lambda b: (0, 0)),            # s2
                pl.BlockSpec((K3, C2, C3), lambda b: (0, 0, 0)),    # w3
                pl.BlockSpec((1, C3), lambda b: (0, 0)),            # s3
                pl.BlockSpec((C3, O), lambda b: (0, 0)),            # linear W
                pl.BlockSpec((1, O), lambda b: (0, 0)),             # linear b
            ],
            out_specs=pl.BlockSpec((1, 1, O), lambda b: (b, 0, 0)),
            scratch_shapes=[
                pltpu.VMEM((L + K2 - 1, C1), jnp.bfloat16),         # padded h1
                pltpu.VMEM((L + K3 - 1, C2), jnp.bfloat16),         # padded h2
            ],
        ),
        compiler_params=pltpu.CompilerParams(
            dimension_semantics=("parallel",)),
    )(x1, w1, s1, w2, s2, w3, s3, lw, lb)
    return out.reshape(B, O)


@jax.jit
def fcn_classifier_forward(x_ncl, params):
    """x_ncl: (B, Cin, L) PyTorch NCL layout -> (B, out_dim) softmax probabilities."""
    B, Cin, L = x_ncl.shape
    h = jnp.transpose(x_ncl, (0, 2, 1)).astype(jnp.float32)         # (B, L, Cin)
    K1 = params["w1"].shape[0] // Cin                               # static under jit
    x1 = _im2col(h, K1).astype(jnp.bfloat16)                        # (B, L, K1*Cin), tiny
    return fcn_fused_forward(x1, params)


# ---------------------------------------------------------------------------
# Parameter construction (deterministic, synthetic) + BN folding
# ---------------------------------------------------------------------------
def _fold_bn(conv_bias, gamma, beta, mean, var):
    s = gamma / jnp.sqrt(var + BN_EPS)
    t = (conv_bias - mean) * s + beta
    return s, t


def init_params(key, in_dim, out_dim):
    specs = [(in_dim, 128, 8), (128, 256, 5), (256, 128, 3)]
    folded = []
    for (cin, cout, k) in specs:
        key, kw, kb, kg, kbe, km, kv = jax.random.split(key, 7)
        w = jax.random.normal(kw, (k, cin, cout), jnp.float32) * 0.1
        b = jax.random.normal(kb, (cout,), jnp.float32) * 0.1
        gamma = 1.0 + 0.1 * jax.random.normal(kg, (cout,), jnp.float32)
        beta = 0.1 * jax.random.normal(kbe, (cout,), jnp.float32)
        mean = 0.1 * jax.random.normal(km, (cout,), jnp.float32)
        var = 0.5 + jnp.abs(jax.random.normal(kv, (cout,), jnp.float32))
        scale, shift = _fold_bn(b, gamma, beta, mean, var)
        w_folded = w * scale[None, None, :]          # BN scale baked into the taps
        folded.append((w_folded, shift.reshape(1, cout)))

    key, kw, kb = jax.random.split(key, 3)
    lw = jax.random.normal(kw, (128, out_dim), jnp.float32) * 0.1
    lb = jax.random.normal(kb, (out_dim,), jnp.float32) * 0.1

    (w1, s1), (w2, s2), (w3, s3) = folded
    k1, cin, c1 = w1.shape
    return dict(
        # layer-1 weight reshaped for im2col (j-major, c-minor), bf16 for the MXU
        w1=w1.reshape(k1 * cin, c1).astype(jnp.bfloat16), s1=s1,
        w2=w2.astype(jnp.bfloat16), s2=s2,
        w3=w3.astype(jnp.bfloat16), s3=s3,
        lw=lw, lb=lb.reshape(1, out_dim),
    )


# ---------------------------------------------------------------------------
# Pure-JAX reference mirroring the kernel numerics (bf16 matmul in / f32 acc)
# ---------------------------------------------------------------------------
def reference_forward(x_ncl, params):
    B, Cin, L = x_ncl.shape
    h = jnp.transpose(x_ncl, (0, 2, 1)).astype(jnp.float32)

    K1 = params["w1"].shape[0] // Cin
    x1 = _im2col(h, K1).astype(jnp.bfloat16)
    h1 = jnp.maximum(
        jnp.einsum("blk,ko->blo", x1, params["w1"],
                   preferred_element_type=jnp.float32) + params["s1"], 0.0
    ).astype(jnp.bfloat16)

    def conv_bn_relu(hx, w, shift):
        K = w.shape[0]
        pl_, pr_ = _same_pads(K)
        Lx = hx.shape[1]
        hp = jnp.pad(hx, ((0, 0), (pl_, pr_), (0, 0)))
        acc = jnp.zeros((hx.shape[0], Lx, w.shape[2]), jnp.float32)
        for j in range(K):
            acc = acc + jnp.einsum("blc,co->blo", hp[:, j:j + Lx, :], w[j],
                                   preferred_element_type=jnp.float32)
        return jnp.maximum(acc + shift, 0.0)

    h2 = conv_bn_relu(h1, params["w2"], params["s2"]).astype(jnp.bfloat16)
    h3 = conv_bn_relu(h2, params["w3"], params["s3"])       # stays f32

    gap = jnp.mean(h3, axis=1)
    logits = gap @ params["lw"] + params["lb"]
    return jax.nn.softmax(logits, axis=1)


if __name__ == "__main__":
    B, IN_DIM, L, OUT_DIM = 2, 4, 16, 3

    key = jax.random.PRNGKey(0)
    key, kx = jax.random.split(key)
    x = jax.random.normal(kx, (B, IN_DIM, L), jnp.float32)   # NCL like PyTorch

    params = init_params(key, IN_DIM, OUT_DIM)

    out = fcn_classifier_forward(x, params)
    out = jax.block_until_ready(out)

    ref = reference_forward(x, params)
    assert out.shape == (B, OUT_DIM)
    assert bool(jnp.allclose(jnp.sum(out, axis=1), 1.0, atol=1e-5))
    assert bool(jnp.allclose(out, ref, atol=1e-3, rtol=1e-3)), (
        f"max abs err {jnp.max(jnp.abs(out - ref))}")

    print("KERNEL_OK")
</pallas_src>

<mosaic_0001>
module attributes {stable_mosaic.version = 11 : i64} {
  func.func @_fcn_fused_kernel(%arg0: i32, %arg1: memref<1x16x32xbf16, #tpu.memory_space<vmem>>, %arg2: memref<32x128xbf16, #tpu.memory_space<vmem>>, %arg3: memref<1x128xf32, #tpu.memory_space<vmem>>, %arg4: memref<5x128x256xbf16, #tpu.memory_space<vmem>>, %arg5: memref<1x256xf32, #tpu.memory_space<vmem>>, %arg6: memref<3x256x128xbf16, #tpu.memory_space<vmem>>, %arg7: memref<1x128xf32, #tpu.memory_space<vmem>>, %arg8: memref<128x3xf32, #tpu.memory_space<vmem>>, %arg9: memref<1x3xf32, #tpu.memory_space<vmem>>, %arg10: memref<1x1x3xf32, #tpu.memory_space<vmem>>, %arg11: memref<20x128xbf16, #tpu.memory_space<vmem>>, %arg12: memref<18x256xbf16, #tpu.memory_space<vmem>>) attributes {dimension_semantics = [#tpu.dimension_semantics<parallel>], iteration_bounds = array<i64: 2>, scalar_prefetch = 0 : i64, scratch_operands = 2 : i64, tpu.core_type = #tpu.core_type<tc>, window_params = [{transform_indices = @transform_0, window_bounds = array<i64: 1, 16, 32>}, {pipeline_mode = #tpu.pipeline_mode<synchronous>, transform_indices = @transform_1, window_bounds = array<i64: 32, 128>}, {pipeline_mode = #tpu.pipeline_mode<synchronous>, transform_indices = @transform_2, window_bounds = array<i64: 1, 128>}, {pipeline_mode = #tpu.pipeline_mode<synchronous>, transform_indices = @transform_3, window_bounds = array<i64: 5, 128, 256>}, {pipeline_mode = #tpu.pipeline_mode<synchronous>, transform_indices = @transform_4, window_bounds = array<i64: 1, 256>}, {pipeline_mode = #tpu.pipeline_mode<synchronous>, transform_indices = @transform_5, window_bounds = array<i64: 3, 256, 128>}, {pipeline_mode = #tpu.pipeline_mode<synchronous>, transform_indices = @transform_6, window_bounds = array<i64: 1, 128>}, {pipeline_mode = #tpu.pipeline_mode<synchronous>, transform_indices = @transform_7, window_bounds = array<i64: 128, 3>}, {pipeline_mode = #tpu.pipeline_mode<synchronous>, transform_indices = @transform_8, window_bounds = array<i64: 1, 3>}, {transform_indices = @transform_9, window_bounds = array<i64: 1, 1, 3>}]} {
    %c0 = arith.constant 0 : index
    %c0_0 = arith.constant 0 : index
    %c0_1 = arith.constant 0 : index
    %0 = vector.load %arg1[%c0, %c0_0, %c0_1] : memref<1x16x32xbf16, #tpu.memory_space<vmem>>, vector<1x16x32xbf16>
    %1 = vector.shape_cast %0 : vector<1x16x32xbf16> to vector<16x32xbf16>
    %c0_2 = arith.constant 0 : index
    %c0_3 = arith.constant 0 : index
    %2 = vector.load %arg2[%c0_2, %c0_3] : memref<32x128xbf16, #tpu.memory_space<vmem>>, vector<32x128xbf16>
    %cst = arith.constant dense<0.000000e+00> : vector<16x128xf32>
    %3 = tpu.matmul %1, %2, %cst {dimension_numbers = #tpu.dot_dimension_numbers<[1], [0], [0], [1], [0, 0, 1, 1], [], []>} : vector<16x32xbf16>, vector<32x128xbf16>, vector<16x128xf32> -> vector<16x128xf32>
    %c0_4 = arith.constant 0 : index
    %c0_5 = arith.constant 0 : index
    %4 = vector.load %arg3[%c0_4, %c0_5] : memref<1x128xf32, #tpu.memory_space<vmem>>, vector<1x128xf32>
    %5 = vector.broadcast %4 : vector<1x128xf32> to vector<16x128xf32>
    %6 = arith.addf %3, %5 : vector<16x128xf32>
    %cst_6 = arith.constant 0.000000e+00 : f32
    %7 = vector.broadcast %cst_6 : f32 to vector<16x128xf32>
    %8 = arith.maximumf %6, %7 : vector<16x128xf32>
    %9 = arith.truncf %8 : vector<16x128xf32> to vector<16x128xbf16>
    %cst_7 = arith.constant 0.000000e+00 : bf16
    %10 = vector.broadcast %cst_7 : bf16 to vector<2x128xbf16>
    %c0_8 = arith.constant 0 : index
    %c0_9 = arith.constant 0 : index
    %11 = vector.load %arg11[%c0_8, %c0_9] : memref<20x128xbf16, #tpu.memory_space<vmem>>, vector<2x128xbf16>
    tpu.vector_store %arg11[%c0_8, %c0_9], %10 {strides = array<i32>} : memref<20x128xbf16, #tpu.memory_space<vmem>>, vector<2x128xbf16>,
    %c2 = arith.constant 2 : index
    %c0_10 = arith.constant 0 : index
    %12 = vector.load %arg11[%c2, %c0_10] : memref<20x128xbf16, #tpu.memory_space<vmem>>, vector<16x128xbf16>
    tpu.vector_store %arg11[%c2, %c0_10], %9 {strides = array<i32>} : memref<20x128xbf16, #tpu.memory_space<vmem>>, vector<16x128xbf16>,
    %cst_11 = arith.constant 0.000000e+00 : bf16
    %13 = vector.broadcast %cst_11 : bf16 to vector<2x128xbf16>
    %c18 = arith.constant 18 : index
    %c0_12 = arith.constant 0 : index
    %14 = vector.load %arg11[%c18, %c0_12] : memref<20x128xbf16, #tpu.memory_space<vmem>>, vector<2x128xbf16>
    tpu.vector_store %arg11[%c18, %c0_12], %13 {strides = array<i32>} : memref<20x128xbf16, #tpu.memory_space<vmem>>, vector<2x128xbf16>,
    %cst_13 = arith.constant 0.000000e+00 : f32
    %15 = vector.broadcast %cst_13 : f32 to vector<16x256xf32>
    %c0_14 = arith.constant 0 : index
    %c0_15 = arith.constant 0 : index
    %16 = vector.load %arg11[%c0_14, %c0_15] : memref<20x128xbf16, #tpu.memory_space<vmem>>, vector<16x128xbf16>
    %c0_16 = arith.constant 0 : index
    %c0_17 = arith.constant 0 : index
    %c0_18 = arith.constant 0 : index
    %17 = vector.load %arg4[%c0_16, %c0_17, %c0_18] : memref<5x128x256xbf16, #tpu.memory_space<vmem>>, vector<1x128x256xbf16>
    %18 = vector.shape_cast %17 : vector<1x128x256xbf16> to vector<128x256xbf16>
    %cst_19 = arith.constant dense<0.000000e+00> : vector<16x256xf32>
    %19 = tpu.matmul %16, %18, %cst_19 {dimension_numbers = #tpu.dot_dimension_numbers<[1], [0], [0], [1], [0, 0, 1, 1], [], []>} : vector<16x128xbf16>, vector<128x256xbf16>, vector<16x256xf32> -> vector<16x256xf32>
    %20 = arith.addf %15, %19 : vector<16x256xf32>
    %c1 = arith.constant 1 : index
    %c0_20 = arith.constant 0 : index
    %21 = vector.load %arg11[%c1, %c0_20] : memref<20x128xbf16, #tpu.memory_space<vmem>>, vector<16x128xbf16>
    %c1_21 = arith.constant 1 : index
    %c0_22 = arith.constant 0 : index
    %c0_23 = arith.constant 0 : index
    %22 = vector.load %arg4[%c1_21, %c0_22, %c0_23] : memref<5x128x256xbf16, #tpu.memory_space<vmem>>, vector<1x128x256xbf16>
    %23 = vector.shape_cast %22 : vector<1x128x256xbf16> to vector<128x256xbf16>
    %cst_24 = arith.constant dense<0.000000e+00> : vector<16x256xf32>
    %24 = tpu.matmul %21, %23, %cst_24 {dimension_numbers = #tpu.dot_dimension_numbers<[1], [0], [0], [1], [0, 0, 1, 1], [], []>} : vector<16x128xbf16>, vector<128x256xbf16>, vector<16x256xf32> -> vector<16x256xf32>
    %25 = arith.addf %20, %24 : vector<16x256xf32>
    %c2_25 = arith.constant 2 : index
    %c0_26 = arith.constant 0 : index
    %26 = vector.load %arg11[%c2_25, %c0_26] : memref<20x128xbf16, #tpu.memory_space<vmem>>, vector<16x128xbf16>
    %c2_27 = arith.constant 2 : index
    %c0_28 = arith.constant 0 : index
    %c0_29 = arith.constant 0 : index
    %27 = vector.load %arg4[%c2_27, %c0_28, %c0_29] : memref<5x128x256xbf16, #tpu.memory_space<vmem>>, vector<1x128x256xbf16>
    %28 = vector.shape_cast %27 : vector<1x128x256xbf16> to vector<128x256xbf16>
    %cst_30 = arith.constant dense<0.000000e+00> : vector<16x256xf32>
    %29 = tpu.matmul %26, %28, %cst_30 {dimension_numbers = #tpu.dot_dimension_numbers<[1], [0], [0], [1], [0, 0, 1, 1], [], []>} : vector<16x128xbf16>, vector<128x256xbf16>, vector<16x256xf32> -> vector<16x256xf32>
    %30 = arith.addf %25, %29 : vector<16x256xf32>
    %c3 = arith.constant 3 : index
    %c0_31 = arith.constant 0 : index
    %31 = vector.load %arg11[%c3, %c0_31] : memref<20x128xbf16, #tpu.memory_space<vmem>>, vector<16x128xbf16>
    %c3_32 = arith.constant 3 : index
    %c0_33 = arith.constant 0 : index
    %c0_34 = arith.constant 0 : index
    %32 = vector.load %arg4[%c3_32, %c0_33, %c0_34] : memref<5x128x256xbf16, #tpu.memory_space<vmem>>, vector<1x128x256xbf16>
    %33 = vector.shape_cast %32 : vector<1x128x256xbf16> to vector<128x256xbf16>
    %cst_35 = arith.constant dense<0.000000e+00> : vector<16x256xf32>
    %34 = tpu.matmul %31, %33, %cst_35 {dimension_numbers = #tpu.dot_dimension_numbers<[1], [0], [0], [1], [0, 0, 1, 1], [], []>} : vector<16x128xbf16>, vector<128x256xbf16>, vector<16x256xf32> -> vector<16x256xf32>
    %35 = arith.addf %30, %34 : vector<16x256xf32>
    %c4 = arith.constant 4 : index
    %c0_36 = arith.constant 0 : index
    %36 = vector.load %arg11[%c4, %c0_36] : memref<20x128xbf16, #tpu.memory_space<vmem>>, vector<16x128xbf16>
    %c4_37 = arith.constant 4 : index
    %c0_38 = arith.constant 0 : index
    %c0_39 = arith.constant 0 : index
    %37 = vector.load %arg4[%c4_37, %c0_38, %c0_39] : memref<5x128x256xbf16, #tpu.memory_space<vmem>>, vector<1x128x256xbf16>
    %38 = vector.shape_cast %37 : vector<1x128x256xbf16> to vector<128x256xbf16>
    %cst_40 = arith.constant dense<0.000000e+00> : vector<16x256xf32>
    %39 = tpu.matmul %36, %38, %cst_40 {dimension_numbers = #tpu.dot_dimension_numbers<[1], [0], [0], [1], [0, 0, 1, 1], [], []>} : vector<16x128xbf16>, vector<128x256xbf16>, vector<16x256xf32> -> vector<16x256xf32>
    %40 = arith.addf %35, %39 : vector<16x256xf32>
    %c0_41 = arith.constant 0 : index
    %c0_42 = arith.constant 0 : index
    %41 = vector.load %arg5[%c0_41, %c0_42] : memref<1x256xf32, #tpu.memory_space<vmem>>, vector<1x256xf32>
    %42 = vector.broadcast %41 : vector<1x256xf32> to vector<16x256xf32>
    %43 = arith.addf %40, %42 : vector<16x256xf32>
    %cst_43 = arith.constant 0.000000e+00 : f32
    %44 = vector.broadcast %cst_43 : f32 to vector<16x256xf32>
    %45 = arith.maximumf %43, %44 : vector<16x256xf32>
    %46 = arith.truncf %45 : vector<16x256xf32> to vector<16x256xbf16>
    %cst_44 = arith.constant 0.000000e+00 : bf16
    %47 = vector.broadcast %cst_44 : bf16 to vector<1x256xbf16>
    %c0_45 = arith.constant 0 : index
    %c0_46 = arith.constant 0 : index
    %48 = vector.load %arg12[%c0_45, %c0_46] : memref<18x256xbf16, #tpu.memory_space<vmem>>, vector<1x256xbf16>
    tpu.vector_store %arg12[%c0_45, %c0_46], %47 {strides = array<i32>} : memref<18x256xbf16, #tpu.memory_space<vmem>>, vector<1x256xbf16>,
    %c1_47 = arith.constant 1 : index
    %c0_48 = arith.constant 0 : index
    %49 = vector.load %arg12[%c1_47, %c0_48] : memref<18x256xbf16, #tpu.memory_space<vmem>>, vector<16x256xbf16>
    tpu.vector_store %arg12[%c1_47, %c0_48], %46 {strides = array<i32>} : memref<18x256xbf16, #tpu.memory_space<vmem>>, vector<16x256xbf16>,
    %cst_49 = arith.constant 0.000000e+00 : bf16
    %50 = vector.broadcast %cst_49 : bf16 to vector<1x256xbf16>
    %c17 = arith.constant 17 : index
    %c0_50 = arith.constant 0 : index
    %51 = vector.load %arg12[%c17, %c0_50] : memref<18x256xbf16, #tpu.memory_space<vmem>>, vector<1x256xbf16>
    tpu.vector_store %arg12[%c17, %c0_50], %50 {strides = array<i32>} : memref<18x256xbf16, #tpu.memory_space<vmem>>, vector<1x256xbf16>,
    %cst_51 = arith.constant 0.000000e+00 : f32
    %52 = vector.broadcast %cst_51 : f32 to vector<16x128xf32>
    %c0_52 = arith.constant 0 : index
    %c0_53 = arith.constant 0 : index
    %53 = vector.load %arg12[%c0_52, %c0_53] : memref<18x256xbf16, #tpu.memory_space<vmem>>, vector<16x256xbf16>
    %c0_54 = arith.constant 0 : index
    %c0_55 = arith.constant 0 : index
    %c0_56 = arith.constant 0 : index
    %54 = vector.load %arg6[%c0_54, %c0_55, %c0_56] : memref<3x256x128xbf16, #tpu.memory_space<vmem>>, vector<1x256x128xbf16>
    %55 = vector.shape_cast %54 : vector<1x256x128xbf16> to vector<256x128xbf16>
    %cst_57 = arith.constant dense<0.000000e+00> : vector<16x128xf32>
    %56 = tpu.matmul %53, %55, %cst_57 {dimension_numbers = #tpu.dot_dimension_numbers<[1], [0], [0], [1], [0, 0, 1, 1], [], []>} : vector<16x256xbf16>, vector<256x128xbf16>, vector<16x128xf32> -> vector<16x128xf32>
    %57 = arith.addf %52, %56 : vector<16x128xf32>
    %c1_58 = arith.constant 1 : index
    %c0_59 = arith.constant 0 : index
    %58 = vector.load %arg12[%c1_58, %c0_59] : memref<18x256xbf16, #tpu.memory_space<vmem>>, vector<16x256xbf16>
    %c1_60 = arith.constant 1 : index
    %c0_61 = arith.constant 0 : index
    %c0_62 = arith.constant 0 : index
    %59 = vector.load %arg6[%c1_60, %c0_61, %c0_62] : memref<3x256x128xbf16, #tpu.memory_space<vmem>>, vector<1x256x128xbf16>
    %60 = vector.shape_cast %59 : vector<1x256x128xbf16> to vector<256x128xbf16>
    %cst_63 = arith.constant dense<0.000000e+00> : vector<16x128xf32>
    %61 = tpu.matmul %58, %60, %cst_63 {dimension_numbers = #tpu.dot_dimension_numbers<[1], [0], [0], [1], [0, 0, 1, 1], [], []>} : vector<16x256xbf16>, vector<256x128xbf16>, vector<16x128xf32> -> vector<16x128xf32>
    %62 = arith.addf %57, %61 : vector<16x128xf32>
    %c2_64 = arith.constant 2 : index
    %c0_65 = arith.constant 0 : index
    %63 = vector.load %arg12[%c2_64, %c0_65] : memref<18x256xbf16, #tpu.memory_space<vmem>>, vector<16x256xbf16>
    %c2_66 = arith.constant 2 : index
    %c0_67 = arith.constant 0 : index
    %c0_68 = arith.constant 0 : index
    %64 = vector.load %arg6[%c2_66, %c0_67, %c0_68] : memref<3x256x128xbf16, #tpu.memory_space<vmem>>, vector<1x256x128xbf16>
    %65 = vector.shape_cast %64 : vector<1x256x128xbf16> to vector<256x128xbf16>
    %cst_69 = arith.constant dense<0.000000e+00> : vector<16x128xf32>
    %66 = tpu.matmul %63, %65, %cst_69 {dimension_numbers = #tpu.dot_dimension_numbers<[1], [0], [0], [1], [0, 0, 1, 1], [], []>} : vector<16x256xbf16>, vector<256x128xbf16>, vector<16x128xf32> -> vector<16x128xf32>
    %67 = arith.addf %62, %66 : vector<16x128xf32>
    %c0_70 = arith.constant 0 : index
    %c0_71 = arith.constant 0 : index
    %68 = vector.load %arg7[%c0_70, %c0_71] : memref<1x128xf32, #tpu.memory_space<vmem>>, vector<1x128xf32>
    %69 = vector.broadcast %68 : vector<1x128xf32> to vector<16x128xf32>
    %70 = arith.addf %67, %69 : vector<16x128xf32>
    %cst_72 = arith.constant 0.000000e+00 : f32
    %71 = vector.broadcast %cst_72 : f32 to vector<16x128xf32>
    %72 = arith.maximumf %70, %71 : vector<16x128xf32>
    %cst_73 = arith.constant dense<0.000000e+00> : vector<128xf32>
    %73 = vector.multi_reduction <add>, %72, %cst_73 [0] : vector<16x128xf32> to vector<128xf32>
    %74 = vector.shape_cast %73 : vector<128xf32> to vector<1x128xf32>
    %cst_74 = arith.constant 1.600000e+01 : f32
    %75 = vector.broadcast %cst_74 : f32 to vector<1x128xf32>
    %76 = arith.divf %74, %75 : vector<1x128xf32>
    %c0_75 = arith.constant 0 : index
    %c0_76 = arith.constant 0 : index
    %77 = vector.load %arg8[%c0_75, %c0_76] : memref<128x3xf32, #tpu.memory_space<vmem>>, vector<128x3xf32>
    %cst_77 = arith.constant dense<0.000000e+00> : vector<1x3xf32>
    %78 = tpu.matmul %76, %77, %cst_77 {dimension_numbers = #tpu.dot_dimension_numbers<[1], [0], [0], [1], [0, 0, 1, 1], [], []>} : vector<1x128xf32>, vector<128x3xf32>, vector<1x3xf32> -> vector<1x3xf32>
    %c0_78 = arith.constant 0 : index
    %c0_79 = arith.constant 0 : index
    %79 = vector.load %arg9[%c0_78, %c0_79] : memref<1x3xf32, #tpu.memory_space<vmem>>, vector<1x3xf32>
    %80 = arith.addf %78, %79 : vector<1x3xf32>
    %cst_80 = arith.constant dense<0xFF800000> : vector<1xf32>
    %81 = vector.multi_reduction <maximumf>, %80, %cst_80 [1] : vector<1x3xf32> to vector<1xf32>
    %82 = vector.shape_cast %81 : vector<1xf32> to vector<1x1xf32>
    %83 = vector.broadcast %82 : vector<1x1xf32> to vector<1x3xf32>
    %84 = arith.subf %80, %83 : vector<1x3xf32>
    %85 = math.exp %84 : vector<1x3xf32>
    %cst_81 = arith.constant dense<0.000000e+00> : vector<1xf32>
    %86 = vector.multi_reduction <add>, %85, %cst_81 [1] : vector<1x3xf32> to vector<1xf32>
    %87 = vector.shape_cast %86 : vector<1xf32> to vector<1x1xf32>
    %88 = vector.broadcast %87 : vector<1x1xf32> to vector<1x3xf32>
    %89 = arith.divf %85, %88 : vector<1x3xf32>
    %c0_82 = arith.constant 0 : index
    %c0_83 = arith.constant 0 : index
    %c0_84 = arith.constant 0 : index
    %90 = vector.load %arg10[%c0_82, %c0_83, %c0_84] : memref<1x1x3xf32, #tpu.memory_space<vmem>>, vector<1x1x3xf32>
    %91 = vector.shape_cast %90 : vector<1x1x3xf32> to vector<1x3xf32>
    %92 = vector.shape_cast %89 : vector<1x3xf32> to vector<1x1x3xf32>
    tpu.vector_store %arg10[%c0_82, %c0_83, %c0_84], %92 {strides = array<i32>} : memref<1x1x3xf32, #tpu.memory_space<vmem>>, vector<1x1x3xf32>,
    return
  }
  func.func @transform_0(%arg0: i32) -> (i32, i32, i32) {
    %c0_i32 = arith.constant 0 : i32
    %c0_i32_0 = arith.constant 0 : i32
    %c0_i32_1 = arith.constant 0 : i32
    return %arg0, %c0_i32, %c0_i32_0 : i32, i32, i32
  }
  func.func @transform_1(%arg0: i32) -> (i32, i32) {
    %c0_i32 = arith.constant 0 : i32
    %c0_i32_0 = arith.constant 0 : i32
    %c0_i32_1 = arith.constant 0 : i32
    return %c0_i32, %c0_i32_0 : i32, i32
  }
  func.func @transform_2(%arg0: i32) -> (i32, i32) {
    %c0_i32 = arith.constant 0 : i32
    %c0_i32_0 = arith.constant 0 : i32
    %c0_i32_1 = arith.constant 0 : i32
    return %c0_i32, %c0_i32_0 : i32, i32
  }
  func.func @transform_3(%arg0: i32) -> (i32, i32, i32) {
    %c0_i32 = arith.constant 0 : i32
    %c0_i32_0 = arith.constant 0 : i32
    %c0_i32_1 = arith.constant 0 : i32
    %c0_i32_2 = arith.constant 0 : i32
    return %c0_i32, %c0_i32_0, %c0_i32_1 : i32, i32, i32
  }
  func.func @transform_4(%arg0: i32) -> (i32, i32) {
    %c0_i32 = arith.constant 0 : i32
    %c0_i32_0 = arith.constant 0 : i32
    %c0_i32_1 = arith.constant 0 : i32
    return %c0_i32, %c0_i32_0 : i32, i32
  }
  func.func @transform_5(%arg0: i32) -> (i32, i32, i32) {
    %c0_i32 = arith.constant 0 : i32
    %c0_i32_0 = arith.constant 0 : i32
    %c0_i32_1 = arith.constant 0 : i32
    %c0_i32_2 = arith.constant 0 : i32
    return %c0_i32, %c0_i32_0, %c0_i32_1 : i32, i32, i32
  }
  func.func @transform_6(%arg0: i32) -> (i32, i32) {
    %c0_i32 = arith.constant 0 : i32
    %c0_i32_0 = arith.constant 0 : i32
    %c0_i32_1 = arith.constant 0 : i32
    return %c0_i32, %c0_i32_0 : i32, i32
  }
  func.func @transform_7(%arg0: i32) -> (i32, i32) {
    %c0_i32 = arith.constant 0 : i32
    %c0_i32_0 = arith.constant 0 : i32
    %c0_i32_1 = arith.constant 0 : i32
    return %c0_i32, %c0_i32_0 : i32, i32
  }
  func.func @transform_8(%arg0: i32) -> (i32, i32) {
    %c0_i32 = arith.constant 0 : i32
    %c0_i32_0 = arith.constant 0 : i32
    %c0_i32_1 = arith.constant 0 : i32
    return %c0_i32, %c0_i32_0 : i32, i32
  }
  func.func @transform_9(%arg0: i32) -> (i32, i32, i32) {
    %c0_i32 = arith.constant 0 : i32
    %c0_i32_0 = arith.constant 0 : i32
    %c0_i32_1 = arith.constant 0 : i32
    return %arg0, %c0_i32, %c0_i32_0 : i32, i32, i32
  }
}

</mosaic_0001>

<bundles_post_ra>
// kernel: fcn_classifier_forward.1
= control target key start
LH: loop header
LB: loop body
LE: loop exit
PB: predicated region body
PF: predicated region fallthrough
CT: control target
= control target key end

     0   :  { %14 = vsyncpa [#allocation5], 0  ;;  %s3323_s0 = inlined_call_operand.vmem [shape: bf16[2,16,32], index: 0, kind: input, shape index: {}]   ;;  %s3324_s1 = inlined_call_operand.vmem [shape: bf16[32,128], index: 1, kind: input, shape index: {}]   ;;  %s3325_s2 = inlined_call_operand.vmem [shape: f32[1,128], index: 2, kind: input, shape index: {}]   ;;  %s3326_s3 = inlined_call_operand.hbm [shape: bf16[5,128,256], index: 3, kind: input, shape index: {}]   ;;  %s3327_s4 = inlined_call_operand.vmem [shape: f32[1,256], index: 4, kind: input, shape index: {}]   ;;  %s3328_s5 = inlined_call_operand.vmem [shape: bf16[3,256,128], index: 5, kind: input, shape index: {}]   ;;  %s3329_s6 = inlined_call_operand.vmem [shape: f32[1,128], index: 6, kind: input, shape index: {}]   ;;  %s3330_s7 = inlined_call_operand.vmem [shape: f32[128,3], index: 7, kind: input, shape index: {}]   ;;  %s3331_s8 = inlined_call_operand.vmem [shape: f32[1,3], index: 8, kind: input, shape index: {}]   ;;  %s3332_s9 = inlined_call_operand.hbm [shape: f32[2,1,3], index: 9, kind: output, shape index: {}]  }
   0x1   :  { %15 = vsyncpa [#allocation6], 0 }
   0x2   :  { %17 = vsyncpa [#allocation6 + $0x1], 0  ;;  %s2862_s30 = smov 0   ;;  %s2864_s10 = smov 0  }
   0x3   :  { %s2866_s11 = smov 0   ;;  %s2868_s12 = smov 0  }
   0x4 LB: > { %s2883_s13 = sadd.s32 4294967295, %s2802_s12   ;;  %s2072_s14 = sadd.s32 4294967294, %s2802_s12   ;;  %s2802_s12 = sphi %s2868_s12, %s3365_s12   ;;  %s2798_s11 = sphi %s2866_s11, %s3364_s11   ;;  %s2794_s10 = sphi %s2864_s10, %s3363_s10   ;;  %s2790_s30 = sphi %s2862_s30, %s3362_s30  }
   0x5   : > { %s2887_s15 = sadd.s32 1, %s2802_s12   ;;  %s224_s16 = sadd.s32 1, %s2798_s11 }
   0x6   : > { %s221_s17 = ssub.s32 %s2802_s12, %s2887_s15  ;;  %p234_p0 = scmp.ne.s32.totalorder %s2798_s11, %s2794_s10 }
   0x7   : > { %p222_p1 = scmp.eq.s32.totalorder %s221_s17, 0  ;;  %p235_p2 = scmp.eq.s32.totalorder %s2883_s13, 1 }
   0x8   : > { %p240_p3 = scmp.ne.s32.totalorder %s2794_s10, %s2790_s30  ;;  %p241_p4 = scmp.eq.s32.totalorder %s2072_s14, 1 }
   0x9   : > { %s2898_s18 = scalar_select %p222_p1, %s2798_s11, %s224_s16  }
   0xa   : > { %p2900_p5 = por %p235_p2, %p234_p0  ;;  %p2904_p6 = por %p241_p4, %p240_p3 }
   0xb   : > { %p2073_p7 = scmp.ge.s32.totalorder %s2802_s12, 1  ;;  %p248_p8 = scmp.lt.s32.totalorder %s2802_s12, 3 }
   0xc   : > { %s3338_s19 = scalar_select %p2900_p5, 1, 0 }
   0xd   : > { %s3339_s20 = scalar_select %p2904_p6, 1, 0 }
   0xe   : > { %p3333_p9 = scmp.eq.s32.totalorder %s2883_s13, 0  ;;  %p2911_p10 = pnand %p2073_p7, %p248_p8 }
   0xf   : > { %s2804_s22 = smov [#allocation4]   ;;  %s2708_s27 = scalar_lea.hbm %s3326_s3, 10240 }
  0x10   : > { %s3340_s21 = scalar_select %p2911_p10, 1, 0 }
  0x11   : > { %s266_s23 = sshll.u32 %s2804_s22, 4  ;;  %p2476_p11 = pneg %p2911_p10  ;;  %s267_s23 = int_to_ptr.vmem [resolvable:$true] %s266_s23 }
  0x12   : > { %p2709_p13 = scmp.ne.s32.totalorder %s3326_s3, %s2708_s27  ;;  %p2715_p3 = scmp.lt.u32.totalorder %s2708_s27, %s3326_s3 }
  0x13   : > { %p2919_p12 = pnand %p3333_p9, %p2476_p11 }
  0x15   : > { %p2710_p0 = pneg %p2919_p12 }
  0x17   : > { %p2711_p1 = pnand %p2710_p0, %p2709_p13 }
  0x19   : > { %p2712_p2 = pneg %p2711_p1 }
  0x1b   : > { %p2717_p4 = pnand %p2715_p3, %p2712_p2 }
  0x1d   : > { %2720 = shalt.err (!%p2717_p4)
}
  0x1e   : > { %s2721_s17 = scalar_lea.vmem %s267_s23, 10240  ;;  %p2729_p9 = scmp.lt.s32.totalorder %s267_s23, %s267_s23 }
  0x1f   : > { %p2722_p7 = scmp.ne.s32.totalorder %s267_s23, %s2721_s17  ;;  %p2730_p6 = scmp.lt.s32.totalorder %s2721_s17, %s2721_s17 }
  0x21   : > { %p2724_p8 = pnand %p2722_p7, %p2710_p0  ;;  %p2731_p5 = por %p2730_p6, %p2729_p9 }
  0x23   : > { %p2725_p11 = pneg %p2724_p8 }
  0x25   : > { %p2732_p10 = pnand %p2731_p5, %p2725_p11 }
  0x27   : > { %2735 = shalt.err (!%p2732_p10)
}
  0x28   : > { %s2805_s22 = smov 128   ;;  %s2806_s25 = smov 8  }
  0x29   : > { %2479 = dma.hbm_to_vmem [thread:$0]  (!%p2919_p12), %s3326_s3, 10240, %s267_s23, [#allocation5], %s2805_s22, %s2805_s22, %s2806_s25  }
  0x2a   : > { %p3342_p13 = scmp.ne.s32.totalorder %s3340_s21, 0 }
  0x2b   : > { %p3343_p1 = scmp.eq.s32.totalorder (!%p3342_p13), %s2883_s13, 0 }
  0x2c   : > { %305 = sbr.rel (%p3342_p13) target bundleno = 1527 (0x5f7), region = 56 }
  0x33   : > { %2781 = dma.done.wait (%p3343_p1), [#allocation5], 10240   ;;  %p3344_p0 = pmov %p3343_p1 }
  0x34   : > { %p340_p5 = scmp.lt.s32.totalorder %s2883_s13, 1  ;;  %v2807_v0 = vmov 0.0   ;;  %vm3336_vm0 = vmmov 0   ;;  %v2526_v1 = vld [vmem:[%s3324_s1] sm:$0xff]   ;;  %v2527_v2 = vld [vmem:[%s3324_s1 + $0x8] sm:$0xff]   ;;  %vm376_vm1 = vcmask 261120  }
  0x35   : > { %2783 = vsyncadd (%p3344_p0), [#allocation5], 4294957056  ;;  %2387 = vmatprep.subr.bf16.mxu0 %v2807_v0  ;;  %2391 = vmatprep.mubr.msk.bf16.mxu0 %vm3336_vm0, %v2807_v0  ;;  %v2529_v3 = vld [vmem:[#allocation4 + $0x84] ss:$8 sps:$4 sm:$0xff]   ;;  %v2531_v5 = vld [vmem:[#allocation4 + $0x80] ss:$8 sps:$4 sm:$0xff]  }
  0x36   : > { %s341_s23 = scalar_select %p340_p5, %s2883_s13, 1  ;;  %2388 = vmatpush3.bf16.msra.mxu0 %v2526_v1  ;;  %583 = vmatprep.subr.bf16.mxu1 %v2529_v3  ;;  %v2532_v6 = vld [vmem:[#allocation4 + $0x94] ss:$8 sps:$4 sm:$0xff]   ;;  %v2534_v7 = vld [vmem:[#allocation4 + $0x90] ss:$8 sps:$4 sm:$0xff]   ;;  %vm430_vm2 = vcmask 1040384  }
  0x37   : > { %2389 = vmatprep.subr.bf16.mxu0 %v2807_v0  ;;  %584 = vmatpush1.bf16.msra.mxu1 %v2531_v5  ;;  %v2535_v8 = vld [vmem:[#allocation4 + $0xa4] ss:$8 sps:$4 sm:$0xff]   ;;  %v2537_v9 = vld [vmem:[#allocation4 + $0xa0] ss:$8 sps:$4 sm:$0xff]   ;;  %v2538_v10 = vld [vmem:[#allocation4 + $0xb4] ss:$8 sps:$4 sm:$0xff]  }
  0x38   : > { %s2296_s24 = sshll.u32 %s341_s23, 3  ;;  %585 = vmatprep.subr.bf16.mxu1 %v2532_v6  ;;  %v2540_v11 = vld [vmem:[#allocation4 + $0xb0] ss:$8 sps:$4 sm:$0xff]   ;;  %vm431_vm3 = vcmask 1044484   ;;  %v2809_v12 = vmov 0   ;;  %vm771_vm15 = vcmask 1046528  }
  0x39   : > { %s344_s16 = scalar_lea.vmem %s3323_s0, %s2296_s24  ;;  %424 = vst [vmem:[#allocation2] sm:$0x1] %v2809_v12  ;;  %615 = vmatprep.mubr.bf16.mxu1 %v2809_v12  ;;  %vm2964_vm4 = vmor %vm430_vm2, %vm431_vm3  ;;  %v2541_v14 = vld [vmem:[#allocation4 + $0xc4] ss:$8 sps:$4 sm:$0xff]   ;;  %v2543_v15 = vld [vmem:[#allocation4 + $0xc0] ss:$8 sps:$4 sm:$0xff]  }
  0x3a   : > { %v2528_v4 = vld [vmem:[%s344_s16] sm:$0xff]   ;;  %2390 = vmatpush3.bf16.msra.mxu0 %v2527_v2  ;;  %vm1245_vm5 = vsmask.f32 256  ;;  %vm1247_vm6 = vsmask.f32 4352  ;;  %s338_s24 = sand.u32 1, %s2794_s10  }
  0x3b   : > { %586 = vmatpush1.bf16.msra.mxu1 %v2534_v7  ;;  %vm2970_vm7 = vmand %vm430_vm2, %vm1245_vm5  ;;  %v1250_v17 = vld [vmem:[#allocation3] sm:$0x11]  ;;  %v2544_v18 = vld [vmem:[#allocation4 + $0xd4] ss:$8 sps:$4 sm:$0xff]   ;;  %vm1284_vm10 = vsmask.f32 7938 }
  0x3c   : > { %587 = vmatprep.subr.bf16.mxu1 %v2535_v8  ;;  %vm2975_vm8 = vmand %vm431_vm3, %vm1247_vm6  ;;  %v2546_v20 = vld [vmem:[#allocation4 + $0xd0] ss:$8 sps:$4 sm:$0xff]   ;;  %v2547_v21 = vld [vmem:[#allocation4 + $0xe4] ss:$8 sps:$4 sm:$0xff]   ;;  %vm1287_vm11 = vsmask.f32 7954 }
  0x3d   : > { %2392 = vmatmul.mubr.msk.bf16.vlgmr.msra.gmra.mrb[0].mxu0 %vm376_vm1, %v2528_v4  ;;  %vm1249_vm9 = vmor %vm2975_vm8, %vm2970_vm7  ;;  %v2549_v24 = vld [vmem:[#allocation4 + $0xe0] ss:$8 sps:$4 sm:$0xff]   ;;  %v2550_v26 = vld [vmem:[#allocation4 + $0xf4] ss:$8 sps:$4 sm:$0xff]   ;;  %vm3337_vm1 = vsmask.f32 7424 }
  0x3e   : > { %v1251_v22 = vsel %vm1249_vm9, 0, %v1250_v17  ;;  %vm2990_vm12 = vmand %vm430_vm2, %vm1284_vm10  ;;  %v2552_v27 = vld [vmem:[#allocation4 + $0xf0] ss:$8 sps:$4 sm:$0xff]   ;;  %v2555_v28 = vld [vmem:[#allocation4 + $0x4] ss:$8 sps:$4 sm:$0xff]   ;;  %vm1286_vm6 = vcmask 1047556  }
  0x3f   : > { %588 = vmatpush1.bf16.msra.mxu1 %v2537_v9  ;;  %1252 = vst [vmem:[#allocation3] sm:$0x11] %v1251_v22  ;;  %vm2996_vm13 = vmand %vm431_vm3, %vm1287_vm11  ;;  %v2080_v29 = vld [vmem:[%s3325_s2] ss:$0 sm:$0xff]  ;;  %v2553_v58 = vld [vmem:[#allocation4] ss:$8 sps:$4 sm:$0xff]  }
  0x40   : > { %589 = vmatprep.subr.bf16.mxu1 %v2538_v10  ;;  %vm1299_vm14 = vmor %vm2996_vm13, %vm2990_vm12  ;;  %v2560_v61 = vld [vmem:[#allocation4 + $0x14] ss:$8 sps:$4 sm:$0xff]   ;;  %v2558_v63 = vld [vmem:[#allocation4 + $0x10] ss:$8 sps:$4 sm:$0xff]   ;;  %vm924_vm2 = vsmask.f32 6400 }
  0x41   : > { %v2563_v1 = vld [vmem:[#allocation4 + $0x24] ss:$8 sps:$4 sm:$0xff]   ;;  %v2561_v2 = vld [vmem:[#allocation4 + $0x20] ss:$8 sps:$4 sm:$0xff]   ;;  %v2566_v3 = vld [vmem:[#allocation4 + $0x34] ss:$8 sps:$4 sm:$0xff]  }
  0x42   : > { %v2564_v4 = vld [vmem:[#allocation4 + $0x30] ss:$8 sps:$4 sm:$0xff]   ;;  %v2569_v5 = vld [vmem:[#allocation4 + $0x44] ss:$8 sps:$4 sm:$0xff]   ;;  %v2567_v6 = vld [vmem:[#allocation4 + $0x40] ss:$8 sps:$4 sm:$0xff]  }
  0x43   : > { %590 = vmatpush1.bf16.msra.mxu1 %v2540_v11  ;;  %v2572_v7 = vld [vmem:[#allocation4 + $0x54] ss:$8 sps:$4 sm:$0xff]   ;;  %v2570_v8 = vld [vmem:[#allocation4 + $0x50] ss:$8 sps:$4 sm:$0xff]   ;;  %v2575_v9 = vld [vmem:[#allocation4 + $0x64] ss:$8 sps:$4 sm:$0xff]  }
  0x44   : > { %591 = vmatprep.subr.bf16.mxu1 %v2541_v14  ;;  %v2573_v10 = vld [vmem:[#allocation4 + $0x60] ss:$8 sps:$4 sm:$0xff]   ;;  %v2578_v11 = vld [vmem:[#allocation4 + $0x74] ss:$8 sps:$4 sm:$0xff]   ;;  %v2576_v13 = vld [vmem:[#allocation4 + $0x70] ss:$8 sps:$4 sm:$0xff]  }
  0x45   : > { %v2581_v14 = vld [vmem:[#allocation4 + $0x104] ss:$8 sps:$4 sm:$0xff]   ;;  %v2584_v17 = vld [vmem:[#allocation4 + $0x114] ss:$8 sps:$4 sm:$0xff]   ;;  %vm1091_vm3 = vcmask 1045504   ;;  %vm3359_vm7 = vmmov 0  }
  0x46   : > { %v2590_v22 = vld [vmem:[#allocation4 + $0x134] ss:$8 sps:$4 sm:$0xff]   ;;  %vm1261_vm0 = vsmask.f32 4368  ;;  %vm1979_vm8 = vcmask 16384   ;;  %s2293_s21 = sshll.u32 %s2883_s13, 4 }
  0x47   : > { %592 = vmatpush1.bf16.msra.mxu1 %v2543_v15  ;;  %v2579_v15 = vld [vmem:[#allocation4 + $0x100] ss:$8 sps:$4 sm:$0xff]   ;;  %s339_s27 = scalar_lea.vmem [#allocation7], %s338_s24  ;;  %s3280_s17 = scalar_lea.hbm %s3332_s9, %s2293_s21 }
  0x48   : > { %593 = vmatprep.subr.bf16.mxu1 %v2544_v18  ;;  %v2582_v18 = vld [vmem:[#allocation4 + $0x110] ss:$8 sps:$4 sm:$0xff]   ;;  %s2005_s29 = sshll.u32 %s339_s27, 4  ;;  %s1993_s22 = scalar_lea.sflag [#allocation6], %s338_s24  ;;  %s3282_s29 = int_to_ptr.vmem [resolvable:$true] %s2005_s29 }
  0x49   : > { %s2736_s25 = scalar_lea.vmem %s3282_s29, 16  ;;  %p3360_p9 = scmp.ne.s32.totalorder %s3338_s19, 0 }
  0x4a   : > { %p2737_p6 = scmp.ne.s32.totalorder %s3282_s29, %s2736_s25  ;;  %s2811_s13 = smov [#allocation7]  }
  0x4b   : > { %594 = vmatpush1.bf16.msra.mxu1 %v2546_v20  ;;  %v2587_v20 = vld [vmem:[#allocation4 + $0x124] ss:$8 sps:$4 sm:$0xff]   ;;  %s2740_s26 = sshll.u32 %s2811_s13, 4  ;;  %s2741_s26 = int_to_ptr.vmem [resolvable:$false] %s2740_s26 }
  0x4c   : > { %595 = vmatprep.subr.bf16.mxu1 %v2547_v21  ;;  %v2585_v21 = vld [vmem:[#allocation4 + $0x120] ss:$8 sps:$4 sm:$0xff]   ;;  %p2738_p10 = pnand %p2737_p6, %p3360_p9  ;;  %s2742_s28 = scalar_lea.vmem %s2741_s26, 32 }
  0x4d   : > { %p2743_p2 = scmp.lt.s32.totalorder %s3282_s29, %s2741_s26  ;;  %p2744_p3 = scmp.lt.s32.totalorder %s2742_s28, %s2736_s25 }
  0x4e   : > { %p2739_p12 = pneg %p2738_p10 }
  0x4f   : > { %596 = vmatpush1.bf16.msra.mxu1 %v2549_v24  ;;  %v2588_v24 = vld [vmem:[#allocation4 + $0x130] ss:$8 sps:$4 sm:$0xff]   ;;  %p2745_p4 = por %p2744_p3, %p2743_p2 }
  0x50   : > { %597 = vmatprep.subr.bf16.mxu1 %v2550_v26  ;;  %v2593_v26 = vld [vmem:[#allocation4 + $0x144] ss:$8 sps:$4 sm:$0xff]  }
  0x51   : > { %p2746_p7 = pnand %p2745_p4, %p2739_p12 }
  0x53   : > { %598 = vmatpush1.bf16.msra.mxu1 %v2552_v27  ;;  %v2591_v27 = vld [vmem:[#allocation4 + $0x140] ss:$8 sps:$4 sm:$0xff]  }
  0x54   : > { %707 = vmatprep.subr.bf16.mxu1 %v2555_v28  ;;  %v2596_v28 = vld [vmem:[#allocation4 + $0x154] ss:$8 sps:$4 sm:$0xff]  }
 0x110   : > { %v414_v30 = vpop.f32.mrb[0].mxu0 }
 0x111   : > { %v415_v31 = vadd.f32 %v2080_v29, %v414_v30  ;;  %v2393_v32 = vpop.f32.mrb[1].mxu0  ;;  %v2599_v30 = vld [vmem:[#allocation4 + $0x164] ss:$8 sps:$4 sm:$0xff]  }
 0x112   : > { %v417_v33 = vpop.f32.mrb[2].mxu0  ;;  %v2602_v32 = vld [vmem:[#allocation4 + $0x174] ss:$8 sps:$4 sm:$0xff]  }
 0x113   : > { %v421_v34 = vmax.f32 %v415_v31, 0.0  ;;  %v418_v35 = vadd.f32 %v2080_v29, %v417_v33  ;;  %v2394_v36 = vpop.f32.mrb[3].mxu0  ;;  %v2594_v29 = vld [vmem:[#allocation4 + $0x150] ss:$8 sps:$4 sm:$0xff]   ;;  %v2597_v31 = vld [vmem:[#allocation4 + $0x160] ss:$8 sps:$4 sm:$0xff]  }
 0x114   : > { %v2600_v33 = vld [vmem:[#allocation4 + $0x170] ss:$8 sps:$4 sm:$0xff]   ;;  %v2609_v36 = vld [vmem:[#allocation4 + $0x194] ss:$8 sps:$4 sm:$0xff]  }
 0x115   : > { %v2297_v37 = vpack.c.bf16 %v421_v34, %v421_v34  ;;  %v422_v38 = vmax.f32 %v418_v35, 0.0  ;;  %v2606_v34 = vld [vmem:[#allocation4 + $0x184] ss:$8 sps:$4 sm:$0xff]   ;;  %v2604_v35 = vld [vmem:[#allocation4 + $0x180] ss:$8 sps:$4 sm:$0xff]  }
 0x117   : > { %v433_v39 = vrot.slane %v2297_v37, 7  ;;  %v2298_v40 = vpack.c.bf16 %v422_v38, %v422_v38  ;;  %v2607_v37 = vld [vmem:[#allocation4 + $0x190] ss:$8 sps:$4 sm:$0xff]   ;;  %v2612_v38 = vld [vmem:[#allocation4 + $0x1a4] ss:$8 sps:$4 sm:$0xff]  }
 0x119   : > { %v434_v41 = vrot.slane %v433_v39, 4  ;;  %441 = vst [vmem:[#allocation2] sm:$0xe] %v433_v39  ;;  %v435_v42 = vrot.slane %v2298_v40, 7  ;;  %v2610_v39 = vld [vmem:[#allocation4 + $0x1a0] ss:$8 sps:$4 sm:$0xff]  }
 0x11a   : > { %v2615_v40 = vld [vmem:[#allocation4 + $0x1b4] ss:$8 sps:$4 sm:$0xff]  }
 0x11b   : > { %v436_v43 = vsel %vm2964_vm4, %v434_v41, %v435_v42  ;;  %v437_v44 = vrot.slane %v435_v42, 4  ;;  %v2613_v41 = vld [vmem:[#allocation4 + $0x1b0] ss:$8 sps:$4 sm:$0xff]   ;;  %v2618_v42 = vld [vmem:[#allocation4 + $0x1c4] ss:$8 sps:$4 sm:$0xff]   ;;  %vm1283_vm4 = vcmask 1043456  }
 0x11c   : > { %442 = vst [vmem:[#allocation2 + $0x4] sm:$0xf] %v436_v43  ;;  %v2616_v43 = vld [vmem:[#allocation4 + $0x1c0] ss:$8 sps:$4 sm:$0xff]  }
 0x11d   : > { %443 = vst [vmem:[#allocation2 + $0x8] sm:$0x1] %v437_v44  ;;  %v2621_v44 = vld [vmem:[#allocation4 + $0x1d4] ss:$8 sps:$4 sm:$0xff]  }
 0x120   : > { %v445_v45 = vld [vmem:[#allocation2] sm:$0xf] }
 0x121   : > { %v750_v47 = vld [vmem:[#allocation2] sm:$0xe] }
 0x123   : > { %v3009_v46 = vld [vmem:[#allocation2 + $0x4] sm:$0xf] }
 0x124   : > { %v2087_v48 = vcombine.low %v445_v45, %v3009_v46  ;;  %v2557_v49 = vld [vmem:[#allocation2 + $0x8] ss:$0 sps:$4 sm:$0x11]   ;;  %v3013_v50 = vcombine.low %v750_v47, %v3009_v46  ;;  %v2619_v47 = vld [vmem:[#allocation4 + $0x1d0] ss:$8 sps:$4 sm:$0xff]  }
 0x125   : > { %v498_v52 = vshll.u32 %v2557_v49, 16  ;;  %v773_v54 = vrot.slane %v2557_v49, 1  ;;  %v3024_v45 = vld [vmem:[#allocation2 + $0x8] ss:$0 sps:$4 sm:$0x33]  }
 0x126   : > { %v493_v51 = vshll.u32 %v2087_v48, 16  ;;  %v772_v53 = vrot.slane %v3013_v50, 1  ;;  %v491_v55 = vshrl.u32 %v2087_v48, 16  ;;  %v926_v49 = vshrl.u32 %v3013_v50, 16 }
 0x127   : > { %v500_v60 = vrot.slane %v498_v52, 1  ;;  %v934_v52 = vshrl.u32 %v3024_v45, 16 }
 0x128   : > { %v495_v56 = vrot.slane %v493_v51, 1  ;;  %v3017_v57 = vsel %vm771_vm15, %v772_v53, %v773_v54  ;;  %v929_v51 = vshll.u32 %v3013_v50, 16  ;;  %v937_v53 = vshll.u32 %v3024_v45, 16  ;;  %v2622_v54 = vld [vmem:[#allocation4 + $0x1e0] ss:$8 sps:$4 sm:$0xff]  }
 0x129   : > { %v2629_v50 = vld [vmem:[#allocation4 + $0x200] ss:$8 sps:$4 sm:$0xff]  }
 0x12a   : > { %v496_v59 = vor.u32 %v495_v56, %v491_v55  ;;  %v2627_v55 = vld [vmem:[#allocation4 + $0x1f4] ss:$8 sps:$4 sm:$0xff]   ;;  %v928_v56 = vrot.slane %v926_v49, 1 }
 0x12c   : > { %v501_v62 = vsel %vm3337_vm1, %v496_v59, %v500_v60  ;;  %v939_v59 = vrot.slane %v937_v53, 2  ;;  %v2625_v60 = vld [vmem:[#allocation4 + $0x1f0] ss:$8 sps:$4 sm:$0xff]  }
 0x12d   : > { %616 = vmatmul.mubr.bf16.vlgmr.msra.gmra.mrb[0].mxu1 %v501_v62 }
 0x12e   : > { %708 = vmatpush1.bf16.msra.mxu1 %v2553_v58  ;;  %739 = vmatprep.mubr.bf16.mxu1 %v2809_v12  ;;  %v936_v58 = vrot.slane %v934_v52, 1 }
 0x12f   : > { %709 = vmatprep.subr.bf16.mxu1 %v2560_v61  ;;  %v2631_v61 = vld [vmem:[#allocation4 + $0x204] ss:$8 sps:$4 sm:$0xff]  }
 0x132   : > { %710 = vmatpush1.bf16.msra.mxu1 %v2558_v63  ;;  %v940_v63 = vor.u32 %v939_v59, %v936_v58 }
 0x133   : > { %711 = vmatprep.subr.bf16.mxu1 %v2563_v1  ;;  %v2634_v1 = vld [vmem:[#allocation4 + $0x214] ss:$8 sps:$4 sm:$0xff]  }
 0x136   : > { %712 = vmatpush1.bf16.msra.mxu1 %v2561_v2 }
 0x137   : > { %713 = vmatprep.subr.bf16.mxu1 %v2566_v3  ;;  %v2632_v3 = vld [vmem:[#allocation4 + $0x210] ss:$8 sps:$4 sm:$0xff]  }
 0x13a   : > { %714 = vmatpush1.bf16.msra.mxu1 %v2564_v4  ;;  %v2637_v4 = vld [vmem:[#allocation4 + $0x224] ss:$8 sps:$4 sm:$0xff]  }
 0x13b   : > { %715 = vmatprep.subr.bf16.mxu1 %v2569_v5  ;;  %v2635_v5 = vld [vmem:[#allocation4 + $0x220] ss:$8 sps:$4 sm:$0xff]  }
 0x13e   : > { %716 = vmatpush1.bf16.msra.mxu1 %v2567_v6  ;;  %v2640_v6 = vld [vmem:[#allocation4 + $0x234] ss:$8 sps:$4 sm:$0xff]  }
 0x13f   : > { %717 = vmatprep.subr.bf16.mxu1 %v2572_v7  ;;  %v2638_v7 = vld [vmem:[#allocation4 + $0x230] ss:$8 sps:$4 sm:$0xff]  }
 0x142   : > { %718 = vmatpush1.bf16.msra.mxu1 %v2570_v8  ;;  %v2643_v8 = vld [vmem:[#allocation4 + $0x244] ss:$8 sps:$4 sm:$0xff]  }
 0x143   : > { %719 = vmatprep.subr.bf16.mxu1 %v2575_v9  ;;  %v2641_v9 = vld [vmem:[#allocation4 + $0x240] ss:$8 sps:$4 sm:$0xff]  }
 0x146   : > { %720 = vmatpush1.bf16.msra.mxu1 %v2573_v10  ;;  %v2646_v10 = vld [vmem:[#allocation4 + $0x254] ss:$8 sps:$4 sm:$0xff]  }
 0x147   : > { %721 = vmatprep.subr.bf16.mxu1 %v2578_v11  ;;  %v2644_v11 = vld [vmem:[#allocation4 + $0x250] ss:$8 sps:$4 sm:$0xff]  }
 0x14a   : > { %722 = vmatpush1.bf16.msra.mxu1 %v2576_v13  ;;  %v2649_v13 = vld [vmem:[#allocation4 + $0x264] ss:$8 sps:$4 sm:$0xff]  }
 0x14b   : > { %856 = vmatprep.subr.bf16.mxu1 %v2581_v14  ;;  %v2652_v14 = vld [vmem:[#allocation4 + $0x274] ss:$8 sps:$4 sm:$0xff]  }
 0x14d   : > { %740 = vmatmul.mubr.bf16.vlgmr.msra.gmra.mrb[0].mxu1 %v2087_v48  ;;  %v2624_v48 = vld [vmem:[#allocation4 + $0x1e4] ss:$8 sps:$4 sm:$0xff]  }
 0x14e   : > { %857 = vmatpush1.bf16.msra.mxu1 %v2579_v15  ;;  %888 = vmatprep.mubr.bf16.mxu1 %v2809_v12  ;;  %v1070_v15 = vld [vmem:[#allocation2] sm:$0xc] }
 0x14f   : > { %858 = vmatprep.subr.bf16.mxu1 %v2584_v17  ;;  %v2155_v17 = vcombine.low %v1070_v15, %v3009_v46  ;;  %v2656_v46 = vld [vmem:[%s3328_s5 + $0xc8] sm:$0xff]  }
 0x152   : > { %859 = vmatpush1.bf16.msra.mxu1 %v2582_v18  ;;  %v2650_v18 = vld [vmem:[#allocation4 + $0x270] ss:$8 sps:$4 sm:$0xff]  }
 0x153   : > { %860 = vmatprep.subr.bf16.mxu1 %v2587_v20  ;;  %v1092_v20 = vrot.slane %v2155_v17, 2 }
 0x156   : > { %861 = vmatpush1.bf16.msra.mxu1 %v2585_v21  ;;  %v1093_v21 = vrot.slane %v3024_v45, 2 }
 0x157   : > { %862 = vmatprep.subr.bf16.mxu1 %v2590_v22 }
 0x158   : > { %v1094_v22 = vsel %vm1091_vm3, %v1092_v20, %v1093_v21  ;;  %vm1288_vm3 = vmand %vm1286_vm6, %vm1287_vm11 }
 0x15a   : > { %863 = vmatpush1.bf16.msra.mxu1 %v2588_v24  ;;  %v2654_v24 = vld [vmem:[%s3328_s5 + $0xc0] sm:$0xff]  }
 0x15b   : > { %864 = vmatprep.subr.bf16.mxu1 %v2593_v26  ;;  %v2655_v26 = vld [vmem:[%s3328_s5 + $0x80] sm:$0xff]   ;;  %2304 = vmatprep.subr.bf16.mxu0 %v2654_v24 }
 0x15c   : > { %2305 = vmatpush3.bf16.msra.mxu0 %v2655_v26 }
 0x15d   : > { %2306 = vmatprep.subr.bf16.mxu0 %v2656_v46 }
 0x15e   : > { %865 = vmatpush1.bf16.msra.mxu1 %v2591_v27  ;;  %v2657_v27 = vld [vmem:[%s3328_s5 + $0x88] sm:$0xff]  }
 0x15f   : > { %866 = vmatprep.subr.bf16.mxu1 %v2596_v28  ;;  %v2658_v28 = vld [vmem:[%s3328_s5 + $0xd0] sm:$0xff]  }
 0x160   : > { %2307 = vmatpush3.bf16.msra.mxu0 %v2657_v27 }
 0x161   : > { %2308 = vmatprep.subr.bf16.mxu0 %v2658_v28 }
 0x162   : > { %867 = vmatpush1.bf16.msra.mxu1 %v2594_v29  ;;  %v2659_v29 = vld [vmem:[%s3328_s5 + $0x90] sm:$0xff]  }
 0x163   : > { %868 = vmatprep.subr.bf16.mxu1 %v2599_v30  ;;  %v2660_v30 = vld [vmem:[%s3328_s5 + $0xd8] sm:$0xff]  }
 0x164   : > { %2309 = vmatpush3.bf16.msra.mxu0 %v2659_v29 }
 0x165   : > { %2310 = vmatprep.subr.bf16.mxu0 %v2660_v30 }
 0x166   : > { %869 = vmatpush1.bf16.msra.mxu1 %v2597_v31  ;;  %v2661_v31 = vld [vmem:[%s3328_s5 + $0x98] sm:$0xff]  }
 0x167   : > { %870 = vmatprep.subr.bf16.mxu1 %v2602_v32  ;;  %v2662_v32 = vld [vmem:[%s3328_s5 + $0xe0] sm:$0xff]  }
 0x168   : > { %2311 = vmatpush3.bf16.msra.mxu0 %v2661_v31 }
 0x169   : > { %2312 = vmatprep.subr.bf16.mxu0 %v2662_v32 }
 0x16a   : > { %871 = vmatpush1.bf16.msra.mxu1 %v2600_v33  ;;  %v2663_v33 = vld [vmem:[%s3328_s5 + $0xa0] sm:$0xff]  }
 0x16b   : > { %1023 = vmatprep.subr.bf16.mxu1 %v2606_v34  ;;  %v2664_v34 = vld [vmem:[%s3328_s5 + $0xe8] sm:$0xff]  }
 0x16c   : > { %2313 = vmatpush3.bf16.msra.mxu0 %v2663_v33 }
 0x16d   : > { %889 = vmatmul.mubr.bf16.vlgmr.msra.gmra.mrb[0].mxu1 %v3017_v57  ;;  %v931_v57 = vrot.slane %v929_v51, 2  ;;  %2314 = vmatprep.subr.bf16.mxu0 %v2664_v34 }
 0x16e   : > { %1024 = vmatpush1.bf16.msra.mxu1 %v2604_v35  ;;  %1055 = vmatprep.mubr.bf16.mxu1 %v2809_v12  ;;  %v2665_v35 = vld [vmem:[%s3328_s5 + $0xa8] sm:$0xff]  }
 0x16f   : > { %1025 = vmatprep.subr.bf16.mxu1 %v2609_v36  ;;  %v932_v62 = vor.u32 %v931_v57, %v928_v56  ;;  %v2666_v36 = vld [vmem:[%s3328_s5 + $0xf0] sm:$0xff]  }
 0x170   : > { %2315 = vmatpush3.bf16.msra.mxu0 %v2665_v35 }
 0x171   : > { %v941_v2 = vsel %vm924_vm2, %v932_v62, %v940_v63  ;;  %2316 = vmatprep.subr.bf16.mxu0 %v2666_v36  ;;  %vm3088_vm2 = vmand %vm1283_vm4, %vm1284_vm10  ;;  %v2690_v63 = vld [vmem:[%s3328_s5 + $0x148] sm:$0xff]  }
 0x172   : > { %1026 = vmatpush1.bf16.msra.mxu1 %v2607_v37  ;;  %v2667_v37 = vld [vmem:[%s3328_s5 + $0xb0] sm:$0xff]   ;;  %vm1289_vm1 = vmor %vm1288_vm3, %vm3088_vm2 }
 0x173   : > { %1027 = vmatprep.subr.bf16.mxu1 %v2612_v38  ;;  %v2668_v38 = vld [vmem:[%s3328_s5 + $0xf8] sm:$0xff]   ;;  %vm1262_vm10 = vmor %vm1245_vm5, %vm1261_vm0  ;;  %vm3357_vm0 = vsmask.f32 7424 }
 0x174   : > { %2317 = vmatpush3.bf16.msra.mxu0 %v2667_v37  ;;  %vm3358_vm5 = vmmov %vm3357_vm0 }
 0x175   : > { %2318 = vmatprep.subr.bf16.mxu0 %v2668_v38 }
 0x176   : > { %1028 = vmatpush1.bf16.msra.mxu1 %v2610_v39  ;;  %v2669_v39 = vld [vmem:[%s3328_s5 + $0xb8] sm:$0xff]  }
 0x177   : > { %1029 = vmatprep.subr.bf16.mxu1 %v2615_v40  ;;  %v2671_v40 = vld [vmem:[%s3328_s5 + $0x40] sm:$0xff]  }
 0x178   : > { %2319 = vmatpush3.bf16.msra.mxu0 %v2669_v39  ;;  %v2673_v39 = vld [vmem:[%s3328_s5] sm:$0xff]  }
 0x179   : > { %2326 = vmatprep.subr.bf16.mxu0 %v2671_v40 }
 0x17a   : > { %1030 = vmatpush1.bf16.msra.mxu1 %v2613_v41  ;;  %v1225_v41 = vlaneseq }
 0x17b   : > { %1031 = vmatprep.subr.bf16.mxu1 %v2618_v42 }
 0x17c   : > { %v1226_v42 = vshrl.u32 %v1225_v41, 7 }
 0x17e   : > { %1032 = vmatpush1.bf16.msra.mxu1 %v2616_v43  ;;  %v1227_v43 = vsub.s32 0, %v1226_v42  ;;  %v1231_v45 = vsub.s32 1, %v1226_v42  ;;  %v2674_v42 = vld [vmem:[%s3328_s5 + $0x48] sm:$0xff]  }
 0x17f   : > { %1033 = vmatprep.subr.bf16.mxu1 %v2621_v44  ;;  %v1223_v44 = vld [vmem:[%s3327_s4] sm:$0x3] }
 0x182   : > { %1034 = vmatpush1.bf16.msra.mxu1 %v2619_v47  ;;  %v1228_v47 = vrot.slane %v1223_v44, %v1227_v43  ;;  %v2675_v43 = vld [vmem:[%s3328_s5 + $0x8] sm:$0xff]  }
 0x183   : > { %1035 = vmatprep.subr.bf16.mxu1 %v2624_v48  ;;  %v1232_v48 = vrot.slane %v1223_v44, %v1231_v45  ;;  %v2676_v44 = vld [vmem:[%s3328_s5 + $0x50] sm:$0xff]  }
 0x184   : > { %v2677_v45 = vld [vmem:[%s3328_s5 + $0x10] sm:$0xff]  }
 0x186   : > { %1036 = vmatpush1.bf16.msra.mxu1 %v2622_v54 }
 0x187   : > { %1037 = vmatprep.subr.bf16.mxu1 %v2627_v55 }
 0x18a   : > { %1038 = vmatpush1.bf16.msra.mxu1 %v2625_v60 }
 0x18b   : > { %1176 = vmatprep.subr.bf16.mxu1 %v2631_v61 }
 0x18d   : > { %1056 = vmatmul.mubr.bf16.vlgmr.msra.gmra.mrb[0].mxu1 %v941_v2 }
 0x18e   : > { %1177 = vmatpush1.bf16.msra.mxu1 %v2629_v50  ;;  %1208 = vmatprep.mubr.bf16.mxu1 %v2809_v12  ;;  %v2647_v12 = vld [vmem:[#allocation4 + $0x260] ss:$8 sps:$4 sm:$0xff]  }
 0x18f   : > { %1178 = vmatprep.subr.bf16.mxu1 %v2634_v1 }
 0x192   : > { %1179 = vmatpush1.bf16.msra.mxu1 %v2632_v3 }
 0x193   : > { %1180 = vmatprep.subr.bf16.mxu1 %v2637_v4 }
 0x196   : > { %1181 = vmatpush1.bf16.msra.mxu1 %v2635_v5  ;;  %v1290_v5 = vld [vmem:[#allocation3] sm:$0xff] }
 0x197   : > { %1182 = vmatprep.subr.bf16.mxu1 %v2640_v6 }
 0x19a   : > { %1183 = vmatpush1.bf16.msra.mxu1 %v2638_v7 }
 0x19b   : > { %1184 = vmatprep.subr.bf16.mxu1 %v2643_v8 }
 0x19e   : > { %1185 = vmatpush1.bf16.msra.mxu1 %v2641_v9  ;;  %v1294_v9 = vld [vmem:[#allocation3 + $0x10] sm:$0x11] }
 0x19f   : > { %1186 = vmatprep.subr.bf16.mxu1 %v2646_v10 }
 0x1a2   : > { %1187 = vmatpush1.bf16.msra.mxu1 %v2644_v11 }
 0x1a3   : > { %1188 = vmatprep.subr.bf16.mxu1 %v2649_v13 }
 0x1a6   : > { %1189 = vmatpush1.bf16.msra.mxu1 %v2647_v12 }
 0x1a7   : > { %1190 = vmatprep.subr.bf16.mxu1 %v2652_v14 }
 0x1aa   : > { %1191 = vmatpush1.bf16.msra.mxu1 %v2650_v18 }
 0x1ad   : > { %1209 = vmatmul.mubr.bf16.vlgmr.msra.gmra.mrb[0].mxu1 %v1094_v22 }
 0x280   : > { %v1210_v49 = vpop.f32.mrb[0].mxu1 }
 0x281   : > { %v1235_v51 = vadd.f32 %v1228_v47, %v1210_v49  ;;  %v1212_v52 = vpop.f32.mrb[1].mxu1  ;;  %v2680_v49 = vld [vmem:[%s3328_s5 + $0x60] sm:$0xff]  }
 0x282   : > { %v1236_v53 = vadd.f32 %v1232_v48, %v1212_v52  ;;  %v1214_v54 = vpop.f32.mrb[2].mxu1  ;;  %v2682_v52 = vld [vmem:[%s3328_s5 + $0x68] sm:$0xff]  }
 0x283   : > { %v1239_v55 = vmax.f32 %v1235_v51, 0.0  ;;  %v1237_v56 = vadd.f32 %v1228_v47, %v1214_v54  ;;  %v1216_v57 = vpop.f32.mrb[3].mxu1  ;;  %v2678_v47 = vld [vmem:[%s3328_s5 + $0x58] sm:$0xff]   ;;  %v2681_v51 = vld [vmem:[%s3328_s5 + $0x20] sm:$0xff]   ;;  %v2684_v54 = vld [vmem:[%s3328_s5 + $0x70] sm:$0xff]  }
 0x284   : > { %v1240_v58 = vmax.f32 %v1236_v53, 0.0  ;;  %v1238_v59 = vadd.f32 %v1232_v48, %v1216_v57  ;;  %v2679_v48 = vld [vmem:[%s3328_s5 + $0x18] sm:$0xff]   ;;  %v2683_v53 = vld [vmem:[%s3328_s5 + $0x28] sm:$0xff]  }
 0x285   : > { %v1241_v60 = vmax.f32 %v1237_v56, 0.0  ;;  %v2686_v56 = vld [vmem:[%s3328_s5 + $0x78] sm:$0xff]  }
 0x286   : > { %v2299_v61 = vpack.c.bf16 %v1240_v58, %v1239_v55  ;;  %v1242_v62 = vmax.f32 %v1238_v59, 0.0  ;;  %v2685_v55 = vld [vmem:[%s3328_s5 + $0x30] sm:$0xff]   ;;  %v2687_v57 = vld [vmem:[%s3328_s5 + $0x38] sm:$0xff]   ;;  %v2688_v58 = vld [vmem:[%s3328_s5 + $0x140] sm:$0xff]  }
 0x288   : > { %v1264_v50 = vshrl.u32 %v2299_v61, 16  ;;  %v2300_v1 = vpack.c.bf16 %v1242_v62, %v1241_v60  ;;  %v1267_v3 = vshll.u32 %v2299_v61, 16  ;;  %v2689_v61 = vld [vmem:[%s3328_s5 + $0x100] sm:$0xff]  }
 0x28a   : > { %v1266_v2 = vrot.slane %v1264_v50, 7  ;;  %v1272_v4 = vshrl.u32 %v2300_v1, 16  ;;  %v1275_v8 = vshll.u32 %v2300_v1, 16  ;;  %v2691_v1 = vld [vmem:[%s3328_s5 + $0x108] sm:$0xff]  }
 0x28c   : > { %v1269_v6 = vor.u32 %v1267_v3, %v1266_v2  ;;  %v1274_v7 = vrot.slane %v1272_v4, 7  ;;  %v1270_v10 = vrot.slane %v1266_v2, 4  ;;  %v2692_v2 = vld [vmem:[%s3328_s5 + $0x150] sm:$0xff]   ;;  %v2694_v4 = vld [vmem:[%s3328_s5 + $0x158] sm:$0xff]  }
 0x28d   : > { %v2693_v3 = vld [vmem:[%s3328_s5 + $0x110] sm:$0xff]  }
 0x28e   : > { %v1291_v11 = vsel %vm1289_vm1, %v1269_v6, %v1290_v5  ;;  %v1277_v13 = vor.u32 %v1275_v8, %v1274_v7  ;;  %v1279_v12 = vrot.slane %v1274_v7, 4  ;;  %v2695_v5 = vld [vmem:[%s3328_s5 + $0x118] sm:$0xff]   ;;  %v2696_v6 = vld [vmem:[%s3328_s5 + $0x160] sm:$0xff]   ;;  %v2698_v8 = vld [vmem:[%s3328_s5 + $0x168] sm:$0xff]  }
 0x28f   : > { %1292 = vst [vmem:[#allocation3] sm:$0xff] %v1291_v11  ;;  %v2697_v7 = vld [vmem:[%s3328_s5 + $0x120] sm:$0xff]  }
 0x290   : > { %v3096_v14 = vsel %vm1262_vm10, %v1270_v10, %v1277_v13  ;;  %v1295_v15 = vsel %vm1249_vm9, %v1279_v12, %v1294_v9  ;;  %v2699_v9 = vld [vmem:[%s3328_s5 + $0x128] sm:$0xff]   ;;  %v2700_v10 = vld [vmem:[%s3328_s5 + $0x170] sm:$0xff]   ;;  %v2702_v13 = vld [vmem:[%s3328_s5 + $0x178] sm:$0xff]  }
 0x291   : > { %1296 = vst [vmem:[#allocation3 + $0x10] sm:$0x11] %v1295_v15  ;;  %v2207_v17 = vcombine.high %v1291_v11, %v3096_v14  ;;  %v3105_v18 = vcombine.low %v1291_v11, %v3096_v14  ;;  %v2701_v11 = vld [vmem:[%s3328_s5 + $0x130] sm:$0xff]   ;;  %v2703_v12 = vld [vmem:[%s3328_s5 + $0x138] sm:$0xff]   ;;  %v1893_v15 = vld [vmem:[%s3330_s7 + $0x8] sm:$0xff] }
 0x293   : > { %v1399_v22 = vshll.u32 %v2207_v17, 16  ;;  %v1387_v16 = vshll.u32 %v3105_v18, 16  ;;  %v1397_v30 = vshrl.u32 %v2207_v17, 16  ;;  %v1385_v31 = vshrl.u32 %v3105_v18, 16 }
 0x295   : > { %v1401_v46 = vrot.slane %v1399_v22, 1  ;;  %v1389_v29 = vrot.slane %v1387_v16, 1  ;;  %v1896_v22 = vld [vmem:[%s3330_s7 + $0x20] sm:$0xff] }
 0x296   : > { %v1686_v19 = vld [vmem:[#allocation3] sm:$0xee] }
 0x297   : > { %v2274_v24 = vcombine.low %v1686_v19, %v3096_v14  ;;  %v1402_v34 = vor.u32 %v1401_v46, %v1397_v30  ;;  %v1390_v36 = vor.u32 %v1389_v29, %v1385_v31  ;;  %v2275_v59 = vcombine.high %v1686_v19, %v3096_v14  ;;  %v1892_v14 = vld [vmem:[%s3330_s7] sm:$0xff]  ;;  %v1897_v19 = vld [vmem:[%s3330_s7 + $0x28] sm:$0xff]  ;;  %v1902_v30 = vld [vmem:[%s3330_s7 + $0x50] sm:$0xff] }
 0x298   : > { %v1300_v20 = vld [vmem:[#allocation3 + $0x10] sm:$0x11]  ;;  %v2437_v16 = vpack.c.bf16 %v1897_v19, %v1896_v22  ;;  %v1903_v31 = vld [vmem:[%s3330_s7 + $0x58] sm:$0xff] }
 0x299   : > { %v1301_v21 = vsel %vm1299_vm14, 0, %v1300_v20  ;;  %v1725_v23 = vrot.slane %v2274_v24, 1  ;;  %v1728_v62 = vrot.slane %v2275_v59, 1  ;;  %v1894_v20 = vld [vmem:[%s3330_s7 + $0x10] sm:$0xff] }
 0x29a   : > { %1302 = vst [vmem:[#allocation3 + $0x10] sm:$0x11] %v1301_v21  ;;  %v1898_v24 = vld [vmem:[%s3330_s7 + $0x30] sm:$0xff] }
 0x2a1   : > { %v1337_v26 = vld [vmem:[#allocation3 + $0x10] sm:$0x11] }
 0x2a2   : > { %v2209_v27 = vcombine.high %v1337_v26, %v1337_v26  ;;  %v2208_v28 = vcombine.low %v1337_v26, %v1337_v26  ;;  %v1899_v26 = vld [vmem:[%s3330_s7 + $0x38] sm:$0xff] }
 0x2a3   : > { %v2440_v46 = vpack.c.bf16 %v1899_v26, %v1898_v24 }
 0x2a4   : > { %v1404_v25 = vshll.u32 %v2209_v27, 16  ;;  %v1392_v32 = vshll.u32 %v2208_v28, 16  ;;  %v1726_v33 = vrot.slane %v2208_v28, 1  ;;  %v1729_v60 = vrot.slane %v2209_v27, 1  ;;  %v1900_v27 = vld [vmem:[%s3330_s7 + $0x40] sm:$0xff]  ;;  %v1901_v28 = vld [vmem:[%s3330_s7 + $0x48] sm:$0xff] }
 0x2a5   : > { %v2443_v29 = vpack.c.bf16 %v1901_v28, %v1900_v27 }
 0x2a6   : > { %v1406_v35 = vrot.slane %v1404_v25, 1  ;;  %v1394_v37 = vrot.slane %v1392_v32, 1  ;;  %v3116_v38 = vsel %vm771_vm15, %v1725_v23, %v1726_v33  ;;  %v1730_v50 = vsel %vm771_vm15, %v1728_v62, %v1729_v60  ;;  %v1904_v32 = vld [vmem:[%s3330_s7 + $0x60] sm:$0xff]  ;;  %v1905_v23 = vld [vmem:[%s3330_s7 + $0x68] sm:$0xff] }
 0x2a7   : > { %v2446_v25 = vpack.c.bf16 %v1903_v31, %v1902_v30  ;;  %v2449_v33 = vpack.c.bf16 %v1905_v23, %v1904_v32 }
 0x2a8   : > { %v1407_v40 = vsel %vm3357_vm0, %v1402_v34, %v1406_v35  ;;  %v1395_v41 = vsel %vm3358_vm5, %v1390_v36, %v1394_v37  ;;  %v1906_v34 = vld [vmem:[%s3330_s7 + $0x70] sm:$0xff]  ;;  %v1907_v35 = vld [vmem:[%s3330_s7 + $0x78] sm:$0xff] }
 0x2a9   : > { %1538 = vmatprep.mubr.bf16.mxu0 %v1407_v40  ;;  %v2452_v36 = vpack.c.bf16 %v1907_v35, %v1906_v34 }
 0x2aa   : > { %1539 = vmatmul.mubr.bf16.vlgmr.msra.gmra.mrb[4].mxu0 %v1395_v41 }
 0x2ab   : > { %2327 = vmatpush3.bf16.msra.mxu0 %v2673_v39  ;;  %1677 = vmatprep.mubr.bf16.mxu0 %v2207_v17  ;;  %v2810_v17 = vmov 0.0|0.0  }
 0x2ac   : > { %2328 = vmatprep.subr.bf16.mxu0 %v2674_v42 }
 0x2af   : > { %2329 = vmatpush3.bf16.msra.mxu0 %v2675_v43 }
 0x2b0   : > { %2330 = vmatprep.subr.bf16.mxu0 %v2676_v44 }
 0x2b3   : > { %2331 = vmatpush3.bf16.msra.mxu0 %v2677_v45 }
 0x2b4   : > { %2332 = vmatprep.subr.bf16.mxu0 %v2678_v47 }
 0x2b7   : > { %2333 = vmatpush3.bf16.msra.mxu0 %v2679_v48 }
 0x2b8   : > { %2334 = vmatprep.subr.bf16.mxu0 %v2680_v49 }
 0x2bb   : > { %2335 = vmatpush3.bf16.msra.mxu0 %v2681_v51 }
 0x2bc   : > { %2336 = vmatprep.subr.bf16.mxu0 %v2682_v52 }
 0x2bf   : > { %2337 = vmatpush3.bf16.msra.mxu0 %v2683_v53 }
 0x2c0   : > { %2338 = vmatprep.subr.bf16.mxu0 %v2684_v54 }
 0x2c3   : > { %2339 = vmatpush3.bf16.msra.mxu0 %v2685_v55 }
 0x2c4   : > { %2340 = vmatprep.subr.bf16.mxu0 %v2686_v56 }
 0x2c7   : > { %2341 = vmatpush3.bf16.msra.mxu0 %v2687_v57  ;;  %v2292_v57 = vld [vmem:[%s3329_s6] ss:$0 sm:$0xff] }
 0x2c8   : > { %2348 = vmatprep.subr.bf16.mxu0 %v2688_v58 }
 0x2ca   : > { %1678 = vmatmul.mubr.bf16.vlgmr.msra.gmra.mrb[8].mxu0 %v3105_v18  ;;  %v2431_v18 = vpack.c.bf16 %v1893_v15, %v1892_v14 }
 0x2cb   : > { %2349 = vmatpush3.bf16.msra.mxu0 %v2689_v61  ;;  %1861 = vmatprep.mubr.bf16.mxu0 %v1730_v50 }
 0x2cc   : > { %2350 = vmatprep.subr.bf16.mxu0 %v2690_v63 }
 0x2cf   : > { %2351 = vmatpush3.bf16.msra.mxu0 %v2691_v1 }
 0x2d0   : > { %2352 = vmatprep.subr.bf16.mxu0 %v2692_v2 }
 0x2d3   : > { %2353 = vmatpush3.bf16.msra.mxu0 %v2693_v3 }
 0x2d4   : > { %2354 = vmatprep.subr.bf16.mxu0 %v2694_v4 }
 0x2d7   : > { %2355 = vmatpush3.bf16.msra.mxu0 %v2695_v5 }
 0x2d8   : > { %2356 = vmatprep.subr.bf16.mxu0 %v2696_v6 }
 0x2db   : > { %2357 = vmatpush3.bf16.msra.mxu0 %v2697_v7 }
 0x2dc   : > { %2358 = vmatprep.subr.bf16.mxu0 %v2698_v8 }
 0x2df   : > { %2359 = vmatpush3.bf16.msra.mxu0 %v2699_v9 }
 0x2e0   : > { %2360 = vmatprep.subr.bf16.mxu0 %v2700_v10  ;;  %v1908_v10 = vld [vmem:[%s3331_s8] sm:$0x1] }
 0x2e3   : > { %2361 = vmatpush3.bf16.msra.mxu0 %v2701_v11 }
 0x2e4   : > { %2362 = vmatprep.subr.bf16.mxu0 %v2702_v13 }
 0x2e7   : > { %2363 = vmatpush3.bf16.msra.mxu0 %v2703_v12 }
 0x2e8   : > { %2430 = vmatprep.subr.bf16.mxu0 %v2810_v17 }
 0x2ea   : > { %1862 = vmatmul.mubr.bf16.vlgmr.msra.gmra.mrb[12].mxu0 %v3116_v38 }
 0x2eb   : > { %2427 = vmatprep.mubr.msk.f32.mxu0 %vm3359_vm7, %v2807_v0  ;;  %2432 = vmatpush3.bf16.msra.mxu0 %v2431_v18  ;;  %v1895_v0 = vld [vmem:[%s3330_s7 + $0x18] sm:$0xff] }
 0x2ec   : > { %2433 = vmatprep.subr.bf16.mxu0 %v2810_v17  ;;  %v2434_v21 = vpack.c.bf16 %v1895_v0, %v1894_v20 }
 0x2ef   : > { %2435 = vmatpush3.bf16.msra.mxu0 %v2434_v21 }
 0x2f0   : > { %2436 = vmatprep.subr.bf16.mxu0 %v2810_v17 }
 0x2f3   : > { %2438 = vmatpush3.bf16.msra.mxu0 %v2437_v16 }
 0x2f4   : > { %2439 = vmatprep.subr.bf16.mxu0 %v2810_v17 }
 0x2f7   : > { %2441 = vmatpush3.bf16.msra.mxu0 %v2440_v46 }
 0x2f8   : > { %2442 = vmatprep.subr.bf16.mxu0 %v2810_v17 }
 0x2fb   : > { %2444 = vmatpush3.bf16.msra.mxu0 %v2443_v29 }
 0x2fc   : > { %2445 = vmatprep.subr.bf16.mxu0 %v2810_v17 }
 0x2ff   : > { %2447 = vmatpush3.bf16.msra.mxu0 %v2446_v25 }
 0x300   : > { %2448 = vmatprep.subr.bf16.mxu0 %v2810_v17 }
 0x303   : > { %2450 = vmatpush3.bf16.msra.mxu0 %v2449_v33 }
 0x304   : > { %2451 = vmatprep.subr.bf16.mxu0 %v2810_v17 }
 0x307   : > { %2453 = vmatpush3.bf16.msra.mxu0 %v2452_v36 }
 0x37d   : > { %v2320_v37 = vpop.f32.mrb[4].mxu0 }
 0x37e   : > { %v2321_v38 = vpop.f32.mrb[5].mxu0 }
 0x37f   : > { %v2322_v39 = vadd.f32 %v2321_v38, %v2320_v37  ;;  %v2323_v40 = vpop.f32.mrb[6].mxu0 }
 0x380   : > { %v2324_v41 = vpop.f32.mrb[7].mxu0 }
 0x381   : > { %v2325_v42 = vadd.f32 %v2324_v41, %v2323_v40 }
 0x39d   : > { %v2342_v43 = vpop.f32.mrb[8].mxu0 }
 0x39e   : > { %v2343_v44 = vpop.f32.mrb[9].mxu0 }
 0x39f   : > { %v2344_v45 = vadd.f32 %v2343_v44, %v2342_v43  ;;  %v2345_v47 = vpop.f32.mrb[10].mxu0 }
 0x3a0   : > { %v2346_v48 = vpop.f32.mrb[11].mxu0 }
 0x3a1   : > { %v1680_v49 = vadd.f32 %v2344_v45, %v2322_v39  ;;  %v2347_v51 = vadd.f32 %v2346_v48, %v2345_v47 }
 0x3a3   : > { %v1683_v52 = vadd.f32 %v2347_v51, %v2325_v42 }
 0x3bd   : > { %v2364_v53 = vpop.f32.mrb[12].mxu0 }
 0x3be   : > { %v2365_v54 = vpop.f32.mrb[13].mxu0 }
 0x3bf   : > { %v2366_v55 = vadd.f32 %v2365_v54, %v2364_v53  ;;  %v2367_v56 = vpop.f32.mrb[14].mxu0 }
 0x3c0   : > { %v2368_v58 = vpop.f32.mrb[15].mxu0 }
 0x3c1   : > { %v1870_v59 = vadd.f32 %v2366_v55, %v1680_v49  ;;  %v2369_v60 = vadd.f32 %v2368_v58, %v2367_v56 }
 0x3c3   : > { %v1879_v61 = vadd.f32 %v2292_v57, %v1870_v59  ;;  %v1871_v62 = vadd.f32 %v2369_v60, %v1683_v52 }
 0x3c5   : > { %v1880_v63 = vadd.f32 %v2292_v57, %v1871_v62  ;;  %v1881_v50 = vmax.f32 %v1879_v61, 0.0 }
 0x3c7   : > { %v1882_v1 = vmax.f32 %v1880_v63, 0.0 }
 0x3c9   : > { %v1883_v2 = vadd.f32 %v1882_v1, %v1881_v50 }
 0x3cb   : > { %v1884_v3 = vrot.slane %v1883_v2, 4 }
 0x3cd   : > { %v1885_v4 = vadd.f32 %v1884_v3, %v1883_v2 }
 0x3cf   : > { %v1886_v5 = vrot.slane %v1885_v4, 2 }
 0x3d1   : > { %v1887_v6 = vadd.f32 %v1886_v5, %v1885_v4 }
 0x3d3   : > { %v1888_v7 = vrot.slane %v1887_v6, 1 }
 0x3d5   : > { %v1889_v8 = vadd.f32 %v1888_v7, %v1887_v6 }
 0x3d7   : > { %v1891_v9 = vmul.f32 0.0625, %v1889_v8 }
 0x3d9   : > { %2428 = vmatmul.mubr.f32.vlgmr.msra.gmra.mrb[16].mxu0 %v1891_v9 }
 0x4ac   : > { %v1975_v11 = vpop.f32.mrb[16].mxu0 }
 0x4ad   : > { %v1976_v13 = vadd.f32 %v1975_v11, %v1908_v10  ;;  %v2429_v12 = vpop.f32.mrb[17].mxu0 }
 0x4af   : > { %v1980_v14 = vsel %vm1979_vm8, %v1976_v13, -inf }
 0x4b0   : > { %1981 = vmax.xlane.f32.xlu0 %v1980_v14 }
 0x53d   : > { %v1982_v15 = vpop.xlane.xlu0 %1981 }
 0x53e   : > { %v1983_v17 = vsub.f32 %v1976_v13, %v1982_v15 }
 0x540   : > { %v1984_v18 = vmul.f32 1.442695, %v1983_v17 }
 0x542   : > { %2704 = vpow2.f32 %v1984_v18 }
 0x54c   : > { %v2705_v20 = vpop.eup %2704 }
 0x54d   : > { %v1986_v0 = vsel %vm1979_vm8, %v2705_v20, 0.0 }
 0x54e   : > { %1987 = vadd.xlane.f32.xlu0 %v1986_v0 }
 0x5db   : > { %v1988_v21 = vpop.xlane.xlu0 %1987 }
 0x5dc   : > { %2706 = vrcp.f32 %v1988_v21 }
 0x5e6   : > { %v2707_v22 = vpop.eup %2706 }
 0x5e7   : > { %v1990_v19 = vmul.f32 %v2707_v22, %v2705_v20 }
 0x5e9   : > { %1991 = vst.msk [vmem:[%s339_s27] sm:$0x1] %vm1979_vm8, %v1990_v19 }
 0x5ea   : > { %2749 = shalt.err (!%p2746_p7)
}
 0x5eb   : > { %s2750_s23 = scalar_lea.hbm %s3280_s17, 16  ;;  %s2754_s27 = scalar_lea.hbm %s3332_s9, 32 }
 0x5ec   : > { %p2751_p8 = scmp.ne.s32.totalorder %s3280_s17, %s2750_s23  ;;  %p2755_p1 = scmp.lt.u32.totalorder %s3280_s17, %s3332_s9 }
 0x5ed   : > { %p2756_p0 = scmp.lt.u32.totalorder %s2754_s27, %s2750_s23  ;;  %p2758_p6 = scmp.lt.u32.totalorder %s2750_s23, %s3280_s17 }
 0x5ee   : > { %p2752_p11 = pnand %p2751_p8, %p3360_p9 }
 0x5ef   : > { %p2757_p5 = por %p2756_p0, %p2755_p1 }
 0x5f0   : > { %p2753_p13 = pneg %p2752_p11 }
 0x5f1   : > { %p2759_p10 = por %p2758_p6, %p2757_p5 }
 0x5f3   : > { %p2760_p12 = pnand %p2759_p10, %p2753_p13 }
 0x5f5   : > { %2763 = shalt.err (!%p2760_p12)
}
 0x5f6   : > { %2474 = dma.vmem_to_hbm [thread:$0]  (%p3360_p9), %s3282_s29, 16, %s3280_s17, %s1993_s22  }
 0x5f7 PF: > { %p2486_p2 = scmp.ge.s32.totalorder %s2802_s12, 2  ;;  %s2017_s25 = sand.u32 1, %s2790_s30  }
 0x5f8   : > { %p3361_p3 = scmp.ne.s32.totalorder %s3339_s20, 0  ;;  %s2018_s13 = scalar_lea.sflag [#allocation6], %s2017_s25 }
 0x5fa   : > { %p2481_p4 = pnand %p2486_p2, %p3361_p3 }
 0x5fc   : > { %2785 = dma.done.wait (!%p2481_p4), %s2018_s13, 16  }
 0x5fd   : > { %2787 = vsyncadd (!%p2481_p4), %s2018_s13, 4294967280  ;;  %p20_p7 = scmp.ge.s32.totalorder %s2887_s15, 4   ;;  %s3362_s30 = smov %s2794_s10 }
 0x5fe   : > { %s3363_s10 = smov %s2798_s11  ;;  %s3364_s11 = smov %s2898_s18 }
 0x5ff   : > { %s3365_s12 = smov %s2887_s15  ;;  %22 = sbr.rel (!%p20_p7) target bundleno = 4 (0x4), region = 102 }
 0x606   :  { %2022 = vsyncpa [#allocation5], 1 }
 0x607   :  { %2024 = vsyncpa [#allocation5 + $0x1], 1 }
 0x608   :  { %2025 = vsyncpa [#allocation6], 1 }
 0x609   :  { %2027 = vsyncpa [#allocation6 + $0x1], 1 }

</bundles_post_ra>
